<compile_context>
chip_gen: v7x
topology: tpu7x:2x2x1
jax: 0.10.0
libtpu: 0.0.40
codegen_flags: <defaults>
</compile_context>

<pallas_src>
import functools
import math

import jax
import jax.numpy as jnp
from jax import lax
from jax.experimental import pallas as pl
from jax.experimental.pallas import tpu as pltpu


def _silu(v):
    return v / (1.0 + jnp.exp(-v))


def _softplus(v):
    # numerically stable softplus using only exp/log
    return jnp.maximum(v, 0.0) + jnp.log(1.0 + jnp.exp(-jnp.abs(v)))


def _round_up(v, m):
    return (v + m - 1) // m * m


def _use_bf16_eup():
    # bf16 EUP/VPU exists on v6e/v7x only; on v5e and older keep f32 (required there).
    try:
        kind = jax.devices()[0].device_kind.lower()
    except Exception:
        return False
    return any(tag in kind for tag in ("v6", "v7", "7x"))


# per-layer parameter arrays (packed/padded), stacked along a leading n_layers axis
_STACKED = ["norm_w", "in_w", "conv_w", "conv_b", "xpdt_w", "dt_b", "a", "d", "out_w"]


# ---------------------------------------------------------------------------
# Fused kernel: grid=(row_tiles, n_layers).  Row tiles contain whole sequences
# (row layout is b*L + l).  Layer 0 applies the input Linear; the last layer
# applies the output Linear + Tanh.  The residual stream lives in h_scr.
# ---------------------------------------------------------------------------
def _fused_net_kernel(
    x_ref, lin_in_w_ref, lin_in_b_ref,
    norm_w_ref, in_w_ref, conv_w_ref, conv_b_ref,
    xpdt_w_ref, dt_b_ref, a_ref, d_ref, out_w_ref,
    lin_out_w_ref, lin_out_b_ref,
    o_ref,
    h_scr,                      # (TR, D_p) resident residual stream across layers
    y_scr,                      # (BT, L, ED_p) scan output staging (per-chunk writes)
    *, BT, CH, D, use_bf16_exp,
):
    layer = pl.program_id(1)
    n_layers = pl.num_programs(1)
    TR = h_scr.shape[0]
    L = TR // BT
    K, ED_p = conv_w_ref.shape[1], conv_w_ref.shape[2]
    N = a_ref.shape[1]

    # ---- input Linear (first layer of each row tile only) ----
    @pl.when(layer == 0)
    def _():
        h_scr[...] = (
            jnp.dot(x_ref[...].astype(jnp.bfloat16), lin_in_w_ref[...],
                    preferred_element_type=jnp.float32)
            + lin_in_b_ref[...])

    xres = h_scr[...]                                        # (TR, D_p) f32

    # ---- RMSNorm (f32); padded D columns are zero so sum/D == mean over real D ----
    ss = jnp.sum(xres * xres, axis=-1, keepdims=True) * (1.0 / D)
    xn = xres * lax.rsqrt(ss + 1e-5) * norm_w_ref[0]

    # ---- fused in_proj: single (D_p, 2*ED_p) matmul; x / z split lane-aligned ----
    xz = jnp.dot(xn.astype(jnp.bfloat16), in_w_ref[0],
                 preferred_element_type=jnp.float32)         # (TR, 2*ED_p)
    xc = xz[:, :ED_p]
    z = xz[:, ED_p:]

    # ---- causal depthwise conv1d (K taps): XLU rolls + per-sequence mask ----
    # row layout assumption: row = b*L + l (rolls wrap across sequences; masked by tpos).
    cw = conv_w_ref[0]                                       # (K, ED_p) f32
    tpos = lax.broadcasted_iota(jnp.int32, (TR, 1), 0) % L   # hoisted once, reused per tap
    acc = xc * cw[K - 1:K, :]                                # tap aligned with x[t]
    for k in range(1, K):                                    # static unroll (K=4)
        shifted = pltpu.roll(xc, shift=k, axis=0)            # row r <- row r-k
        acc = acc + jnp.where(tpos >= k, shifted, 0.0) * cw[K - 1 - k:K - k, :]
    xc = _silu(acc + conv_b_ref[0])                          # (TR, ED_p)

    # ---- fused x_proj (+ host-folded dt_proj): [delta_pre | B | C], splits aligned ----
    xpo = jnp.dot(xc.astype(jnp.bfloat16), xpdt_w_ref[0],
                  preferred_element_type=jnp.float32)        # (TR, ED_p + BC_p)
    delta = _softplus(xpo[:, :ED_p] + dt_b_ref[0])           # (TR, ED_p)
    Bm = xpo[:, ED_p:ED_p + N]
    Cm = xpo[:, ED_p + N:ED_p + 2 * N]

    # ---- selective scan: per-timestep dA/dBx (bounded live set), per-chunk y writeback ----
    A = a_ref[0]                                             # (N, ED_p) = -exp(A_log), host-precomputed
    delta3 = delta.reshape(BT, L, ED_p)
    dxc3 = (delta * xc).reshape(BT, L, ED_p)                 # delta*x computed once
    Bm3 = Bm.reshape(BT, L, N)
    Cm3 = Cm.reshape(BT, L, N)

    h = jnp.zeros((BT, N, ED_p), jnp.float32)
    # TODO(synk): for very long sequences, switch the static chunk loop to a
    # lax.fori_loop over chunks (carrying h) to bound trace size.
    for c in range(L // CH):
        t0 = c * CH
        ys = []
        for t in range(CH):                                  # static unroll within chunk
            tt = t0 + t
            dA_arg = delta3[:, tt, None, :] * A              # (BT, N, ED_p)
            if use_bf16_exp:                                 # v6e/v7x: bf16 EUP, f32 recurrence
                dA = jnp.exp(dA_arg.astype(jnp.bfloat16)).astype(jnp.float32)
            else:
                dA = jnp.exp(dA_arg)
            h = dA * h + dxc3[:, tt, None, :] * Bm3[:, tt, :, None]
            ys.append(jnp.sum(Cm3[:, tt, :, None] * h, axis=1))   # (BT, ED_p) sublane reduce
        y_scr[:, t0:t0 + CH, :] = jnp.stack(ys, axis=1)      # one aligned store per chunk

    y = y_scr[...].reshape(TR, ED_p) + d_ref[0] * xc         # D-skip on post-conv SiLU'd x

    # ---- gate, out_proj, residual ----
    gated = (y * _silu(z)).astype(jnp.bfloat16)
    new_h = xres + jnp.dot(gated, out_w_ref[0], preferred_element_type=jnp.float32)
    h_scr[...] = new_h

    # ---- output Linear + Tanh (last layer only); lane-dense (OD_p) store ----
    @pl.when(layer == n_layers - 1)
    def _():
        o_ref[...] = jnp.tanh(
            jnp.dot(new_h.astype(jnp.bfloat16), lin_out_w_ref[...],
                    preferred_element_type=jnp.float32)
            + lin_out_b_ref[...])


# ---------------------------------------------------------------------------
# Host-side packing: fold dt_proj into x_proj, precompute A = -exp(A_log),
# pad all lane dims (D, ED, output, [delta|B|C] groups) to multiples of 128,
# and cast matmul weights to bf16.  Padded rows/cols are zero so results are
# unchanged.  (In production this would be done once, not per call.)
# ---------------------------------------------------------------------------
def _pack_params(params):
    f32 = jnp.float32
    D = params["lin_in_w"].shape[1]
    out_dim = params["lin_out_w"].shape[1]
    nl, K, ED = params["conv_w"].shape
    N = params["a_log"].shape[1]
    R = params["dt_w"].shape[1]
    D_p = _round_up(D, 128)
    ED_p = _round_up(ED, 128)
    OD_p = _round_up(out_dim, 128)
    BC_p = _round_up(2 * N, 128)

    def padc(a, width):  # zero-pad last dim to `width`
        return jnp.pad(a, [(0, 0)] * (a.ndim - 1) + [(0, width - a.shape[-1])])

    p = {}
    p["lin_in_w"] = padc(params["lin_in_w"].astype(f32), D_p).astype(jnp.bfloat16)
    p["lin_in_b"] = padc(params["lin_in_b"], D_p)
    p["norm_w"] = padc(params["norm_w"], D_p)

    iw = params["in_w"].astype(f32)                          # (nl, D, 2*ED) -> [x | z] lane-aligned
    iw_p = jnp.zeros((nl, D_p, 2 * ED_p), f32)
    iw_p = iw_p.at[:, :D, :ED].set(iw[:, :, :ED])
    iw_p = iw_p.at[:, :D, ED_p:ED_p + ED].set(iw[:, :, ED:])
    p["in_w"] = iw_p.astype(jnp.bfloat16)

    p["conv_w"] = padc(params["conv_w"], ED_p)
    p["conv_b"] = padc(params["conv_b"], ED_p)

    # fold dt_proj (tiny contraction K=R) into x_proj: [delta_pre (ED_p) | B,C (BC_p)]
    # TODO(synk): keep the separate low-rank form instead when dt_rank >= 128.
    xw = params["xp_w"].astype(f32)                          # (nl, ED, R+2N)
    dtw = params["dt_w"].astype(f32)                         # (nl, R, ED)
    delta_w = jnp.einsum("ler,lrf->lef", xw[:, :, :R], dtw)  # (nl, ED, ED)
    xpdt = jnp.zeros((nl, ED_p, ED_p + BC_p), f32)
    xpdt = xpdt.at[:, :ED, :ED].set(delta_w)
    xpdt = xpdt.at[:, :ED, ED_p:ED_p + 2 * N].set(xw[:, :, R:])
    p["xpdt_w"] = xpdt.astype(jnp.bfloat16)

    p["dt_b"] = padc(params["dt_b"], ED_p)
    p["a"] = padc(-jnp.exp(params["a_log"]), ED_p)           # A = -exp(A_log), host-side
    p["d"] = padc(params["d"], ED_p)

    ow = jnp.zeros((nl, ED_p, D_p), f32).at[:, :ED, :D].set(params["out_w"].astype(f32))
    p["out_w"] = ow.astype(jnp.bfloat16)

    low = jnp.zeros((D_p, OD_p), f32).at[:D, :out_dim].set(params["lin_out_w"].astype(f32))
    p["lin_out_w"] = low.astype(jnp.bfloat16)
    p["lin_out_b"] = padc(params["lin_out_b"], OD_p)

    dims = dict(D=D, ED=ED, N=N, out_dim=out_dim,
                D_p=D_p, ED_p=ED_p, OD_p=OD_p, BC_p=BC_p)
    return p, dims


def _vmem_limit_bytes(stacked, fixed_arrays, tile_rows, in_dim, d_p, od_p, bt, L, ed_p):
    # Budget = double-buffered per-layer weight blocks + constant blocks
    #          + resident scratches + double-buffered x/out blocks + headroom,
    # clamped to the chip's physical VMEM (v7x: 64 MiB; v5e/v6e: 128 MiB).
    try:
        cap = int(pltpu.get_tpu_info().vmem_capacity_bytes)
    except Exception:
        cap = 64 * 1024 * 1024
    per_layer = sum(int(math.prod(w.shape[1:])) * w.dtype.itemsize for w in stacked)
    fixed = sum(int(a.size) * a.dtype.itemsize for a in fixed_arrays)
    blocks = 2 * tile_rows * (in_dim + od_p) * 4
    scratch = tile_rows * d_p * 4 + bt * L * ed_p * 4
    need = 2 * per_layer + fixed + blocks + scratch + (8 << 20)
    # TODO(synk): at production widths where a single layer's weights exceed this
    # budget, add an ED-tiling grid axis for in_proj/x_proj/out_proj.
    return int(min(max(need, 32 << 20), cap - (2 << 20)))


# ---------------------------------------------------------------------------
# Wrapper: one pallas_call for the whole network.
# ---------------------------------------------------------------------------
def net_forward(x, params):
    B, L, in_dim = x.shape
    p, dims = _pack_params(params)
    D, N = dims["D"], dims["N"]
    D_p, ED_p, OD_p, BC_p = dims["D_p"], dims["ED_p"], dims["OD_p"], dims["BC_p"]
    out_dim = dims["out_dim"]
    n_layers = p["in_w"].shape[0]
    BL = B * L
    CH = 8 if L % 8 == 0 else L

    # row tiling: whole sequences per tile (conv/scan need contiguous sequences);
    # the parallel row axis lets v7x shard tiles across both TensorCores.
    target_rows = 512
    bt = B
    if B * L > target_rows:
        bt = 1
        for cand in range(1, B + 1):
            if B % cand == 0 and cand * L <= target_rows:
                bt = cand
    TR = bt * L
    if B // bt > 1 and TR % 8 != 0:      # keep sublane-aligned tiles; else single tile
        bt, TR = B, BL
    row_tiles = B // bt

    x2d = x.reshape(BL, in_dim)
    stacked = [p[k] for k in _STACKED]

    in_specs = [
        pl.BlockSpec((TR, in_dim), lambda r, l: (r, 0)),
        pl.BlockSpec(p["lin_in_w"].shape, lambda r, l: (0, 0)),
        pl.BlockSpec(p["lin_in_b"].shape, lambda r, l: (0, 0)),
    ]
    in_specs += [pl.BlockSpec((1,) + w.shape[1:], lambda r, l: (l, 0, 0)) for w in stacked]
    in_specs += [
        pl.BlockSpec(p["lin_out_w"].shape, lambda r, l: (0, 0)),
        pl.BlockSpec(p["lin_out_b"].shape, lambda r, l: (0, 0)),
    ]

    fixed = [p["lin_in_w"], p["lin_in_b"], p["lin_out_w"], p["lin_out_b"]]
    vmem_limit = _vmem_limit_bytes(stacked, fixed, TR, in_dim, D_p, OD_p, bt, L, ED_p)

    # advisory cost hint for the scheduler
    mm_flops = 2 * BL * (in_dim * D_p + D_p * OD_p
                         + n_layers * (D_p * 2 * ED_p + ED_p * (ED_p + BC_p) + ED_p * D_p))
    scan_flops = 6 * n_layers * BL * N * ED_p
    transcendentals = n_layers * BL * (4 * ED_p + N * ED_p) + BL * OD_p
    args = [x2d, p["lin_in_w"], p["lin_in_b"], *stacked, p["lin_out_w"], p["lin_out_b"]]
    bytes_accessed = int(sum(int(a.size) * a.dtype.itemsize for a in args) + BL * OD_p * 4)

    out2d = pl.pallas_call(
        functools.partial(_fused_net_kernel, BT=bt, CH=CH, D=D,
                          use_bf16_exp=_use_bf16_eup()),
        out_shape=jax.ShapeDtypeStruct((BL, OD_p), jnp.float32),
        grid=(row_tiles, n_layers),
        in_specs=in_specs,
        out_specs=pl.BlockSpec((TR, OD_p), lambda r, l: (r, 0)),
        scratch_shapes=[pltpu.VMEM((TR, D_p), jnp.float32),
                        pltpu.VMEM((bt, L, ED_p), jnp.float32)],
        compiler_params=pltpu.CompilerParams(
            dimension_semantics=("parallel", "arbitrary"),   # rows parallel, layers sequential
            vmem_limit_bytes=vmem_limit),
        cost_estimate=pl.CostEstimate(
            flops=int(mm_flops + scan_flops),
            transcendentals=int(transcendentals),
            bytes_accessed=bytes_accessed),
    )(*args)
    return out2d[:, :out_dim].reshape(-1)      # strip lane padding; matches torch .flatten()


# ---------------------------------------------------------------------------
# Deterministic synthetic parameter init (MambaConfig defaults: d_state=16,
# expand=2, d_conv=4, dt_rank=ceil(d_model/16), bias=False, conv_bias=True).
# Logical (torch-equivalent) f32 params; packing/fusing/padding is done in
# _pack_params.  dt_proj bias uses the reference init.
# ---------------------------------------------------------------------------
def init_params(key, in_dim, hidden, out_dim, n_layers,
                d_state=16, expand=2, d_conv=4):
    D = hidden
    ED = expand * D
    R = max(1, math.ceil(D / 16))
    keys = jax.random.split(key, 4 + 8 * n_layers)
    it = iter(keys)

    def rand(shape, scale):
        return jax.random.normal(next(it), shape, jnp.float32) * scale

    params = {
        "lin_in_w": rand((in_dim, D), 1.0 / math.sqrt(in_dim)),
        "lin_in_b": rand((1, D), 0.02),
        "lin_out_w": rand((D, out_dim), 1.0 / math.sqrt(D)),
        "lin_out_b": rand((1, out_dim), 0.02),
    }

    a_log_one = (jnp.log(jnp.arange(1, d_state + 1, dtype=jnp.float32))[:, None]
                 * jnp.ones((1, ED), jnp.float32))            # (N, ED)

    norm_w, in_w, conv_w, conv_b = [], [], [], []
    xp_w, dt_w, dt_b, a_log, dd, out_w = [], [], [], [], [], []
    for _ in range(n_layers):
        norm_w.append(jnp.ones((1, D), jnp.float32))
        in_w.append(rand((D, 2 * ED), 1.0 / math.sqrt(D)))
        conv_w.append(rand((d_conv, ED), 1.0 / math.sqrt(d_conv)))
        conv_b.append(rand((1, ED), 0.02))
        xp_w.append(rand((ED, R + 2 * d_state), 1.0 / math.sqrt(ED)))
        dt_std = R ** -0.5
        dt_w.append(jax.random.uniform(next(it), (R, ED), jnp.float32, -dt_std, dt_std))
        dt = jnp.exp(jax.random.uniform(next(it), (1, ED), jnp.float32)
                     * (math.log(0.1) - math.log(1e-3)) + math.log(1e-3))
        dt = jnp.maximum(dt, 1e-4)
        dt_b.append(dt + jnp.log(-jnp.expm1(-dt)))            # inverse softplus
        a_log.append(a_log_one)
        dd.append(jnp.ones((1, ED), jnp.float32))
        out_w.append(rand((ED, D), 1.0 / math.sqrt(ED)))

    params.update(
        norm_w=jnp.stack(norm_w), in_w=jnp.stack(in_w), conv_w=jnp.stack(conv_w),
        conv_b=jnp.stack(conv_b), xp_w=jnp.stack(xp_w), dt_w=jnp.stack(dt_w),
        dt_b=jnp.stack(dt_b), a_log=jnp.stack(a_log), d=jnp.stack(dd),
        out_w=jnp.stack(out_w))
    return params


# ---------------------------------------------------------------------------
# Pure-JAX f32 reference (for a loose structural check against the kernel).
# ---------------------------------------------------------------------------
def _ref_forward(x, params):
    ED = params["conv_w"].shape[2]
    N = params["a_log"].shape[1]
    R = params["dt_w"].shape[1]
    K = params["conv_w"].shape[1]
    n_layers = params["in_w"].shape[0]
    B, L, _ = x.shape
    h = x @ params["lin_in_w"] + params["lin_in_b"]
    for i in range(n_layers):
        xr = h
        xn = xr * lax.rsqrt(jnp.mean(xr * xr, -1, keepdims=True) + 1e-5) * params["norm_w"][i]
        xz = xn @ params["in_w"][i]
        xc, z = xz[..., :ED], xz[..., ED:]
        cw = params["conv_w"][i]
        xpad = jnp.pad(xc, ((0, 0), (K - 1, 0), (0, 0)))
        conv = sum(cw[j] * xpad[:, j:j + L, :] for j in range(K)) + params["conv_b"][i]
        xc = conv * jax.nn.sigmoid(conv)
        xp = xc @ params["xp_w"][i]
        dt_low, Bm, Cm = xp[..., :R], xp[..., R:R + N], xp[..., R + N:]
        delta = jax.nn.softplus(dt_low @ params["dt_w"][i] + params["dt_b"][i])
        A = -jnp.exp(params["a_log"][i])
        hs = jnp.zeros((B, N, ED), jnp.float32)
        ys = []
        for t in range(L):
            dA = jnp.exp(delta[:, t, None, :] * A)
            hs = dA * hs + (delta[:, t] * xc[:, t])[:, None, :] * Bm[:, t, :, None]
            ys.append(jnp.sum(Cm[:, t, :, None] * hs, axis=1))
        y = jnp.stack(ys, axis=1) + params["d"][i] * xc
        h = xr + (y * (z * jax.nn.sigmoid(z))) @ params["out_w"][i]
    o = jnp.tanh(h @ params["lin_out_w"] + params["lin_out_b"])
    return o.reshape(-1)


if __name__ == "__main__":
    B, L = 2, 8
    in_dim, hidden, out_dim, n_layers = 4, 32, 4, 2   # args.hidden=32, args.layer=2
    key = jax.random.PRNGKey(0)
    kx, kp = jax.random.split(key)
    x = jax.random.normal(kx, (B, L, in_dim), jnp.float32)
    params = init_params(kp, in_dim, hidden, out_dim, n_layers)

    fwd = jax.jit(net_forward)
    out = jax.block_until_ready(fwd(x, params))
    assert out.shape == (B * L * out_dim,), out.shape
    assert bool(jnp.all(jnp.isfinite(out)))

    # loose structural check vs an f32 reference using the same bf16-quantized matmul weights
    mm_keys = ("lin_in_w", "lin_out_w", "in_w", "xp_w", "dt_w", "out_w")
    qparams = {k: (v.astype(jnp.bfloat16).astype(jnp.float32) if k in mm_keys else v)
               for k, v in params.items()}
    ref = _ref_forward(x, qparams)
    err = float(jnp.max(jnp.abs(out - ref)))
    assert err < 0.15, f"kernel/reference mismatch: max abs err = {err}"
    print("KERNEL_OK")
</pallas_src>

<mosaic_0001>
module attributes {stable_mosaic.version = 11 : i64} {
  func.func @_fused_net_kernel(%arg0: i32, %arg1: i32, %arg2: memref<16x4xf32, #tpu.memory_space<vmem>>, %arg3: memref<4x128xbf16, #tpu.memory_space<vmem>>, %arg4: memref<1x128xf32, #tpu.memory_space<vmem>>, %arg5: memref<1x1x128xf32, #tpu.memory_space<vmem>>, %arg6: memref<1x128x256xbf16, #tpu.memory_space<vmem>>, %arg7: memref<1x4x128xf32, #tpu.memory_space<vmem>>, %arg8: memref<1x1x128xf32, #tpu.memory_space<vmem>>, %arg9: memref<1x128x256xbf16, #tpu.memory_space<vmem>>, %arg10: memref<1x1x128xf32, #tpu.memory_space<vmem>>, %arg11: memref<1x16x128xf32, #tpu.memory_space<vmem>>, %arg12: memref<1x1x128xf32, #tpu.memory_space<vmem>>, %arg13: memref<1x128x128xbf16, #tpu.memory_space<vmem>>, %arg14: memref<128x128xbf16, #tpu.memory_space<vmem>>, %arg15: memref<1x128xf32, #tpu.memory_space<vmem>>, %arg16: memref<16x128xf32, #tpu.memory_space<vmem>>, %arg17: memref<16x128xf32, #tpu.memory_space<vmem>>, %arg18: memref<2x8x128xf32, #tpu.memory_space<vmem>>) attributes {dimension_semantics = [#tpu.dimension_semantics<parallel>, #tpu.dimension_semantics<arbitrary>], iteration_bounds = array<i64: 1, 2>, scalar_prefetch = 0 : i64, scratch_operands = 2 : i64, tpu.core_type = #tpu.core_type<tc>, window_params = [{transform_indices = @transform_0, window_bounds = array<i64: 16, 4>}, {pipeline_mode = #tpu.pipeline_mode<synchronous>, transform_indices = @transform_1, window_bounds = array<i64: 4, 128>}, {pipeline_mode = #tpu.pipeline_mode<synchronous>, transform_indices = @transform_2, window_bounds = array<i64: 1, 128>}, {transform_indices = @transform_3, window_bounds = array<i64: 1, 1, 128>}, {transform_indices = @transform_4, window_bounds = array<i64: 1, 128, 256>}, {transform_indices = @transform_5, window_bounds = array<i64: 1, 4, 128>}, {transform_indices = @transform_6, window_bounds = array<i64: 1, 1, 128>}, {transform_indices = @transform_7, window_bounds = array<i64: 1, 128, 256>}, {transform_indices = @transform_8, window_bounds = array<i64: 1, 1, 128>}, {transform_indices = @transform_9, window_bounds = array<i64: 1, 16, 128>}, {transform_indices = @transform_10, window_bounds = array<i64: 1, 1, 128>}, {transform_indices = @transform_11, window_bounds = array<i64: 1, 128, 128>}, {pipeline_mode = #tpu.pipeline_mode<synchronous>, transform_indices = @transform_12, window_bounds = array<i64: 128, 128>}, {pipeline_mode = #tpu.pipeline_mode<synchronous>, transform_indices = @transform_13, window_bounds = array<i64: 1, 128>}, {transform_indices = @transform_14, window_bounds = array<i64: 16, 128>}]} {
    %c0_i32 = arith.constant 0 : i32
    %0 = arith.cmpi eq, %arg1, %c0_i32 : i32
    %1 = arith.extui %0 : i1 to i32
    %c0_i32_0 = arith.constant 0 : i32
    %2 = arith.cmpi ne, %1, %c0_i32_0 : i32
    scf.if %2 {
      %c0_71 = arith.constant 0 : index
      %c0_72 = arith.constant 0 : index
      %351 = vector.load %arg2[%c0_71, %c0_72] : memref<16x4xf32, #tpu.memory_space<vmem>>, vector<16x4xf32>
      %352 = arith.truncf %351 : vector<16x4xf32> to vector<16x4xbf16>
      %c0_73 = arith.constant 0 : index
      %c0_74 = arith.constant 0 : index
      %353 = vector.load %arg3[%c0_73, %c0_74] : memref<4x128xbf16, #tpu.memory_space<vmem>>, vector<4x128xbf16>
      %cst_75 = arith.constant dense<0.000000e+00> : vector<16x128xf32>
      %354 = tpu.matmul %352, %353, %cst_75 {dimension_numbers = #tpu.dot_dimension_numbers<[1], [0], [0], [1], [0, 0, 1, 1], [], []>} : vector<16x4xbf16>, vector<4x128xbf16>, vector<16x128xf32> -> vector<16x128xf32>
      %c0_76 = arith.constant 0 : index
      %c0_77 = arith.constant 0 : index
      %355 = vector.load %arg4[%c0_76, %c0_77] : memref<1x128xf32, #tpu.memory_space<vmem>>, vector<1x128xf32>
      %356 = vector.broadcast %355 : vector<1x128xf32> to vector<16x128xf32>
      %357 = arith.addf %354, %356 : vector<16x128xf32>
      %c0_78 = arith.constant 0 : index
      %c0_79 = arith.constant 0 : index
      %358 = vector.load %arg17[%c0_78, %c0_79] : memref<16x128xf32, #tpu.memory_space<vmem>>, vector<16x128xf32>
      tpu.vector_store %arg17[%c0_78, %c0_79], %357 {strides = array<i32>} : memref<16x128xf32, #tpu.memory_space<vmem>>, vector<16x128xf32>,
    } else {
    }
    %c0 = arith.constant 0 : index
    %c0_1 = arith.constant 0 : index
    %3 = vector.load %arg17[%c0, %c0_1] : memref<16x128xf32, #tpu.memory_space<vmem>>, vector<16x128xf32>
    %4 = arith.mulf %3, %3 : vector<16x128xf32>
    %cst = arith.constant dense<0.000000e+00> : vector<16xf32>
    %5 = vector.multi_reduction <add>, %4, %cst [1] : vector<16x128xf32> to vector<16xf32>
    %6 = vector.shape_cast %5 : vector<16xf32> to vector<16x1xf32>
    %cst_2 = arith.constant 3.125000e-02 : f32
    %7 = vector.broadcast %cst_2 : f32 to vector<16x1xf32>
    %8 = arith.mulf %6, %7 : vector<16x1xf32>
    %cst_3 = arith.constant 9.99999974E-6 : f32
    %9 = vector.broadcast %cst_3 : f32 to vector<16x1xf32>
    %10 = arith.addf %8, %9 : vector<16x1xf32>
    %11 = math.rsqrt %10 : vector<16x1xf32>
    %12 = vector.broadcast %11 : vector<16x1xf32> to vector<16x128xf32>
    %13 = arith.mulf %3, %12 : vector<16x128xf32>
    %c0_4 = arith.constant 0 : index
    %c0_5 = arith.constant 0 : index
    %c0_6 = arith.constant 0 : index
    %14 = vector.load %arg5[%c0_4, %c0_5, %c0_6] : memref<1x1x128xf32, #tpu.memory_space<vmem>>, vector<1x1x128xf32>
    %15 = vector.shape_cast %14 : vector<1x1x128xf32> to vector<1x128xf32>
    %16 = vector.broadcast %15 : vector<1x128xf32> to vector<16x128xf32>
    %17 = arith.mulf %13, %16 : vector<16x128xf32>
    %18 = arith.truncf %17 : vector<16x128xf32> to vector<16x128xbf16>
    %c0_7 = arith.constant 0 : index
    %c0_8 = arith.constant 0 : index
    %c0_9 = arith.constant 0 : index
    %19 = vector.load %arg6[%c0_7, %c0_8, %c0_9] : memref<1x128x256xbf16, #tpu.memory_space<vmem>>, vector<1x128x256xbf16>
    %20 = vector.shape_cast %19 : vector<1x128x256xbf16> to vector<128x256xbf16>
    %cst_10 = arith.constant dense<0.000000e+00> : vector<16x256xf32>
    %21 = tpu.matmul %18, %20, %cst_10 {dimension_numbers = #tpu.dot_dimension_numbers<[1], [0], [0], [1], [0, 0, 1, 1], [], []>} : vector<16x128xbf16>, vector<128x256xbf16>, vector<16x256xf32> -> vector<16x256xf32>
    %22 = vector.extract_strided_slice %21 {offsets = [0, 0], sizes = [16, 128], strides = [1, 1]} : vector<16x256xf32> to vector<16x128xf32>
    %23 = vector.extract_strided_slice %21 {offsets = [0, 128], sizes = [16, 128], strides = [1, 1]} : vector<16x256xf32> to vector<16x128xf32>
    %c0_11 = arith.constant 0 : index
    %c0_12 = arith.constant 0 : index
    %c0_13 = arith.constant 0 : index
    %24 = vector.load %arg7[%c0_11, %c0_12, %c0_13] : memref<1x4x128xf32, #tpu.memory_space<vmem>>, vector<1x4x128xf32>
    %25 = vector.shape_cast %24 : vector<1x4x128xf32> to vector<4x128xf32>
    %26 = tpu.iota {dimensions = array<i32: 0>} : vector<16x1xi32>
    %c8_i32 = arith.constant 8 : i32
    %c0_i32_14 = arith.constant 0 : i32
    %27 = arith.cmpi eq, %c8_i32, %c0_i32_14 : i32
    %c1_i32 = arith.constant 1 : i32
    %28 = arith.select %27, %c1_i32, %c8_i32 : i32
    %29 = vector.broadcast %28 : i32 to vector<16x1xi32>
    %30 = arith.remsi %26, %29 : vector<16x1xi32>
    %c0_i32_15 = arith.constant 0 : i32
    %31 = vector.broadcast %c0_i32_15 : i32 to vector<16x1xi32>
    %32 = arith.cmpi ne, %30, %31 : vector<16x1xi32>
    %c0_i32_16 = arith.constant 0 : i32
    %33 = vector.broadcast %c0_i32_16 : i32 to vector<16x1xi32>
    %34 = arith.cmpi slt, %30, %33 : vector<16x1xi32>
    %c0_i32_17 = arith.constant 0 : i32
    %35 = arith.cmpi slt, %28, %c0_i32_17 : i32
    %36 = vector.broadcast %35 : i1 to vector<16x1xi1>
    %37 = vector.broadcast %36 : vector<16x1xi1> to vector<16x1xi1>
    %38 = arith.xori %34, %37 : vector<16x1xi1>
    %39 = arith.andi %38, %32 : vector<16x1xi1>
    %40 = vector.broadcast %28 : i32 to vector<16x1xi32>
    %41 = arith.addi %30, %40 : vector<16x1xi32>
    %42 = arith.select %39, %41, %30 : vector<16x1xi1>, vector<16x1xi32>
    %43 = vector.extract_strided_slice %25 {offsets = [3, 0], sizes = [1, 128], strides = [1, 1]} : vector<4x128xf32> to vector<1x128xf32>
    %44 = vector.broadcast %43 : vector<1x128xf32> to vector<16x128xf32>
    %45 = arith.mulf %22, %44 : vector<16x128xf32>
    %c1_i32_18 = arith.constant 1 : i32
    %46 = tpu.dynamic_rotate %22 by %c1_i32_18 dim 0 : vector<16x128xf32>, i32 -> vector<16x128xf32>
    %c1_i32_19 = arith.constant 1 : i32
    %47 = vector.broadcast %c1_i32_19 : i32 to vector<16x1xi32>
    %48 = arith.cmpi sge, %42, %47 : vector<16x1xi32>
    %cst_20 = arith.constant 0.000000e+00 : f32
    %49 = vector.shape_cast %48 : vector<16x1xi1> to vector<16x1xi1>
    %50 = vector.broadcast %49 : vector<16x1xi1> to vector<16x128xi1>
    %51 = vector.broadcast %cst_20 : f32 to vector<16x128xf32>
    %52 = arith.select %50, %46, %51 : vector<16x128xi1>, vector<16x128xf32>
    %53 = vector.extract_strided_slice %25 {offsets = [2, 0], sizes = [1, 128], strides = [1, 1]} : vector<4x128xf32> to vector<1x128xf32>
    %54 = vector.broadcast %53 : vector<1x128xf32> to vector<16x128xf32>
    %55 = arith.mulf %52, %54 : vector<16x128xf32>
    %56 = arith.addf %45, %55 : vector<16x128xf32>
    %c2_i32 = arith.constant 2 : i32
    %57 = tpu.dynamic_rotate %22 by %c2_i32 dim 0 : vector<16x128xf32>, i32 -> vector<16x128xf32>
    %c2_i32_21 = arith.constant 2 : i32
    %58 = vector.broadcast %c2_i32_21 : i32 to vector<16x1xi32>
    %59 = arith.cmpi sge, %42, %58 : vector<16x1xi32>
    %cst_22 = arith.constant 0.000000e+00 : f32
    %60 = vector.shape_cast %59 : vector<16x1xi1> to vector<16x1xi1>
    %61 = vector.broadcast %60 : vector<16x1xi1> to vector<16x128xi1>
    %62 = vector.broadcast %cst_22 : f32 to vector<16x128xf32>
    %63 = arith.select %61, %57, %62 : vector<16x128xi1>, vector<16x128xf32>
    %64 = vector.extract_strided_slice %25 {offsets = [1, 0], sizes = [1, 128], strides = [1, 1]} : vector<4x128xf32> to vector<1x128xf32>
    %65 = vector.broadcast %64 : vector<1x128xf32> to vector<16x128xf32>
    %66 = arith.mulf %63, %65 : vector<16x128xf32>
    %67 = arith.addf %56, %66 : vector<16x128xf32>
    %c3_i32 = arith.constant 3 : i32
    %68 = tpu.dynamic_rotate %22 by %c3_i32 dim 0 : vector<16x128xf32>, i32 -> vector<16x128xf32>
    %c3_i32_23 = arith.constant 3 : i32
    %69 = vector.broadcast %c3_i32_23 : i32 to vector<16x1xi32>
    %70 = arith.cmpi sge, %42, %69 : vector<16x1xi32>
    %cst_24 = arith.constant 0.000000e+00 : f32
    %71 = vector.shape_cast %70 : vector<16x1xi1> to vector<16x1xi1>
    %72 = vector.broadcast %71 : vector<16x1xi1> to vector<16x128xi1>
    %73 = vector.broadcast %cst_24 : f32 to vector<16x128xf32>
    %74 = arith.select %72, %68, %73 : vector<16x128xi1>, vector<16x128xf32>
    %75 = vector.extract_strided_slice %25 {offsets = [0, 0], sizes = [1, 128], strides = [1, 1]} : vector<4x128xf32> to vector<1x128xf32>
    %76 = vector.broadcast %75 : vector<1x128xf32> to vector<16x128xf32>
    %77 = arith.mulf %74, %76 : vector<16x128xf32>
    %78 = arith.addf %67, %77 : vector<16x128xf32>
    %c0_25 = arith.constant 0 : index
    %c0_26 = arith.constant 0 : index
    %c0_27 = arith.constant 0 : index
    %79 = vector.load %arg8[%c0_25, %c0_26, %c0_27] : memref<1x1x128xf32, #tpu.memory_space<vmem>>, vector<1x1x128xf32>
    %80 = vector.shape_cast %79 : vector<1x1x128xf32> to vector<1x128xf32>
    %81 = vector.broadcast %80 : vector<1x128xf32> to vector<16x128xf32>
    %82 = arith.addf %78, %81 : vector<16x128xf32>
    %cst_28 = arith.constant 0.000000e+00 : f32
    %83 = vector.broadcast %cst_28 : f32 to vector<16x128xf32>
    %84 = arith.subf %83, %82 : vector<16x128xf32>
    %85 = math.exp %84 : vector<16x128xf32>
    %cst_29 = arith.constant 1.000000e+00 : f32
    %86 = vector.broadcast %cst_29 : f32 to vector<16x128xf32>
    %87 = arith.addf %86, %85 : vector<16x128xf32>
    %88 = arith.divf %82, %87 : vector<16x128xf32>
    %89 = arith.truncf %88 : vector<16x128xf32> to vector<16x128xbf16>
    %c0_30 = arith.constant 0 : index
    %c0_31 = arith.constant 0 : index
    %c0_32 = arith.constant 0 : index
    %90 = vector.load %arg9[%c0_30, %c0_31, %c0_32] : memref<1x128x256xbf16, #tpu.memory_space<vmem>>, vector<1x128x256xbf16>
    %91 = vector.shape_cast %90 : vector<1x128x256xbf16> to vector<128x256xbf16>
    %cst_33 = arith.constant dense<0.000000e+00> : vector<16x256xf32>
    %92 = tpu.matmul %89, %91, %cst_33 {dimension_numbers = #tpu.dot_dimension_numbers<[1], [0], [0], [1], [0, 0, 1, 1], [], []>} : vector<16x128xbf16>, vector<128x256xbf16>, vector<16x256xf32> -> vector<16x256xf32>
    %93 = vector.extract_strided_slice %92 {offsets = [0, 0], sizes = [16, 128], strides = [1, 1]} : vector<16x256xf32> to vector<16x128xf32>
    %c0_34 = arith.constant 0 : index
    %c0_35 = arith.constant 0 : index
    %c0_36 = arith.constant 0 : index
    %94 = vector.load %arg10[%c0_34, %c0_35, %c0_36] : memref<1x1x128xf32, #tpu.memory_space<vmem>>, vector<1x1x128xf32>
    %95 = vector.shape_cast %94 : vector<1x1x128xf32> to vector<1x128xf32>
    %96 = vector.broadcast %95 : vector<1x128xf32> to vector<16x128xf32>
    %97 = arith.addf %93, %96 : vector<16x128xf32>
    %cst_37 = arith.constant 0.000000e+00 : f32
    %98 = vector.broadcast %cst_37 : f32 to vector<16x128xf32>
    %99 = arith.maximumf %97, %98 : vector<16x128xf32>
    %100 = math.absf %97 : vector<16x128xf32>
    %cst_38 = arith.constant 0.000000e+00 : f32
    %101 = vector.broadcast %cst_38 : f32 to vector<16x128xf32>
    %102 = arith.subf %101, %100 : vector<16x128xf32>
    %103 = math.exp %102 : vector<16x128xf32>
    %cst_39 = arith.constant 1.000000e+00 : f32
    %104 = vector.broadcast %cst_39 : f32 to vector<16x128xf32>
    %105 = arith.addf %104, %103 : vector<16x128xf32>
    %106 = math.log %105 : vector<16x128xf32>
    %107 = arith.addf %99, %106 : vector<16x128xf32>
    %108 = vector.extract_strided_slice %92 {offsets = [0, 128], sizes = [16, 16], strides = [1, 1]} : vector<16x256xf32> to vector<16x16xf32>
    %109 = vector.extract_strided_slice %92 {offsets = [0, 144], sizes = [16, 16], strides = [1, 1]} : vector<16x256xf32> to vector<16x16xf32>
    %c0_40 = arith.constant 0 : index
    %c0_41 = arith.constant 0 : index
    %c0_42 = arith.constant 0 : index
    %110 = vector.load %arg11[%c0_40, %c0_41, %c0_42] : memref<1x16x128xf32, #tpu.memory_space<vmem>>, vector<1x16x128xf32>
    %111 = vector.shape_cast %110 : vector<1x16x128xf32> to vector<16x128xf32>
    %112 = vector.shape_cast %107 : vector<16x128xf32> to vector<2x8x128xf32>
    %113 = arith.mulf %107, %88 : vector<16x128xf32>
    %114 = vector.shape_cast %113 : vector<16x128xf32> to vector<2x8x128xf32>
    %115 = vector.shape_cast %108 : vector<16x16xf32> to vector<2x8x16xf32>
    %116 = vector.shape_cast %109 : vector<16x16xf32> to vector<2x8x16xf32>
    %cst_43 = arith.constant 0.000000e+00 : f32
    %117 = vector.broadcast %cst_43 : f32 to vector<2x16x128xf32>
    %118 = vector.extract_strided_slice %112 {offsets = [0, 0, 0], sizes = [2, 1, 128], strides = [1, 1, 1]} : vector<2x8x128xf32> to vector<2x1x128xf32>
    %119 = vector.shape_cast %118 : vector<2x1x128xf32> to vector<2x128xf32>
    %120 = vector.shape_cast %119 : vector<2x128xf32> to vector<2x1x128xf32>
    %121 = vector.shape_cast %111 : vector<16x128xf32> to vector<1x16x128xf32>
    %122 = vector.broadcast %120 : vector<2x1x128xf32> to vector<2x16x128xf32>
    %123 = vector.broadcast %121 : vector<1x16x128xf32> to vector<2x16x128xf32>
    %124 = arith.mulf %122, %123 : vector<2x16x128xf32>
    %125 = math.exp %124 : vector<2x16x128xf32>
    %126 = arith.mulf %125, %117 : vector<2x16x128xf32>
    %127 = vector.extract_strided_slice %114 {offsets = [0, 0, 0], sizes = [2, 1, 128], strides = [1, 1, 1]} : vector<2x8x128xf32> to vector<2x1x128xf32>
    %128 = vector.shape_cast %127 : vector<2x1x128xf32> to vector<2x128xf32>
    %129 = vector.shape_cast %128 : vector<2x128xf32> to vector<2x1x128xf32>
    %130 = vector.extract_strided_slice %115 {offsets = [0, 0, 0], sizes = [2, 1, 16], strides = [1, 1, 1]} : vector<2x8x16xf32> to vector<2x1x16xf32>
    %131 = vector.shape_cast %130 : vector<2x1x16xf32> to vector<2x16xf32>
    %132 = vector.shape_cast %131 : vector<2x16xf32> to vector<2x16x1xf32>
    %133 = vector.broadcast %129 : vector<2x1x128xf32> to vector<2x16x128xf32>
    %134 = vector.broadcast %132 : vector<2x16x1xf32> to vector<2x16x128xf32>
    %135 = arith.mulf %133, %134 : vector<2x16x128xf32>
    %136 = arith.addf %126, %135 : vector<2x16x128xf32>
    %137 = vector.extract_strided_slice %116 {offsets = [0, 0, 0], sizes = [2, 1, 16], strides = [1, 1, 1]} : vector<2x8x16xf32> to vector<2x1x16xf32>
    %138 = vector.shape_cast %137 : vector<2x1x16xf32> to vector<2x16xf32>
    %139 = vector.shape_cast %138 : vector<2x16xf32> to vector<2x16x1xf32>
    %140 = vector.broadcast %139 : vector<2x16x1xf32> to vector<2x16x128xf32>
    %141 = arith.mulf %140, %136 : vector<2x16x128xf32>
    %cst_44 = arith.constant dense<0.000000e+00> : vector<2x128xf32>
    %142 = vector.multi_reduction <add>, %141, %cst_44 [1] : vector<2x16x128xf32> to vector<2x128xf32>
    %143 = vector.extract_strided_slice %112 {offsets = [0, 1, 0], sizes = [2, 1, 128], strides = [1, 1, 1]} : vector<2x8x128xf32> to vector<2x1x128xf32>
    %144 = vector.shape_cast %143 : vector<2x1x128xf32> to vector<2x128xf32>
    %145 = vector.shape_cast %144 : vector<2x128xf32> to vector<2x1x128xf32>
    %146 = vector.shape_cast %111 : vector<16x128xf32> to vector<1x16x128xf32>
    %147 = vector.broadcast %145 : vector<2x1x128xf32> to vector<2x16x128xf32>
    %148 = vector.broadcast %146 : vector<1x16x128xf32> to vector<2x16x128xf32>
    %149 = arith.mulf %147, %148 : vector<2x16x128xf32>
    %150 = math.exp %149 : vector<2x16x128xf32>
    %151 = arith.mulf %150, %136 : vector<2x16x128xf32>
    %152 = vector.extract_strided_slice %114 {offsets = [0, 1, 0], sizes = [2, 1, 128], strides = [1, 1, 1]} : vector<2x8x128xf32> to vector<2x1x128xf32>
    %153 = vector.shape_cast %152 : vector<2x1x128xf32> to vector<2x128xf32>
    %154 = vector.shape_cast %153 : vector<2x128xf32> to vector<2x1x128xf32>
    %155 = vector.extract_strided_slice %115 {offsets = [0, 1, 0], sizes = [2, 1, 16], strides = [1, 1, 1]} : vector<2x8x16xf32> to vector<2x1x16xf32>
    %156 = vector.shape_cast %155 : vector<2x1x16xf32> to vector<2x16xf32>
    %157 = vector.shape_cast %156 : vector<2x16xf32> to vector<2x16x1xf32>
    %158 = vector.broadcast %154 : vector<2x1x128xf32> to vector<2x16x128xf32>
    %159 = vector.broadcast %157 : vector<2x16x1xf32> to vector<2x16x128xf32>
    %160 = arith.mulf %158, %159 : vector<2x16x128xf32>
    %161 = arith.addf %151, %160 : vector<2x16x128xf32>
    %162 = vector.extract_strided_slice %116 {offsets = [0, 1, 0], sizes = [2, 1, 16], strides = [1, 1, 1]} : vector<2x8x16xf32> to vector<2x1x16xf32>
    %163 = vector.shape_cast %162 : vector<2x1x16xf32> to vector<2x16xf32>
    %164 = vector.shape_cast %163 : vector<2x16xf32> to vector<2x16x1xf32>
    %165 = vector.broadcast %164 : vector<2x16x1xf32> to vector<2x16x128xf32>
    %166 = arith.mulf %165, %161 : vector<2x16x128xf32>
    %cst_45 = arith.constant dense<0.000000e+00> : vector<2x128xf32>
    %167 = vector.multi_reduction <add>, %166, %cst_45 [1] : vector<2x16x128xf32> to vector<2x128xf32>
    %168 = vector.extract_strided_slice %112 {offsets = [0, 2, 0], sizes = [2, 1, 128], strides = [1, 1, 1]} : vector<2x8x128xf32> to vector<2x1x128xf32>
    %169 = vector.shape_cast %168 : vector<2x1x128xf32> to vector<2x128xf32>
    %170 = vector.shape_cast %169 : vector<2x128xf32> to vector<2x1x128xf32>
    %171 = vector.shape_cast %111 : vector<16x128xf32> to vector<1x16x128xf32>
    %172 = vector.broadcast %170 : vector<2x1x128xf32> to vector<2x16x128xf32>
    %173 = vector.broadcast %171 : vector<1x16x128xf32> to vector<2x16x128xf32>
    %174 = arith.mulf %172, %173 : vector<2x16x128xf32>
    %175 = math.exp %174 : vector<2x16x128xf32>
    %176 = arith.mulf %175, %161 : vector<2x16x128xf32>
    %177 = vector.extract_strided_slice %114 {offsets = [0, 2, 0], sizes = [2, 1, 128], strides = [1, 1, 1]} : vector<2x8x128xf32> to vector<2x1x128xf32>
    %178 = vector.shape_cast %177 : vector<2x1x128xf32> to vector<2x128xf32>
    %179 = vector.shape_cast %178 : vector<2x128xf32> to vector<2x1x128xf32>
    %180 = vector.extract_strided_slice %115 {offsets = [0, 2, 0], sizes = [2, 1, 16], strides = [1, 1, 1]} : vector<2x8x16xf32> to vector<2x1x16xf32>
    %181 = vector.shape_cast %180 : vector<2x1x16xf32> to vector<2x16xf32>
    %182 = vector.shape_cast %181 : vector<2x16xf32> to vector<2x16x1xf32>
    %183 = vector.broadcast %179 : vector<2x1x128xf32> to vector<2x16x128xf32>
    %184 = vector.broadcast %182 : vector<2x16x1xf32> to vector<2x16x128xf32>
    %185 = arith.mulf %183, %184 : vector<2x16x128xf32>
    %186 = arith.addf %176, %185 : vector<2x16x128xf32>
    %187 = vector.extract_strided_slice %116 {offsets = [0, 2, 0], sizes = [2, 1, 16], strides = [1, 1, 1]} : vector<2x8x16xf32> to vector<2x1x16xf32>
    %188 = vector.shape_cast %187 : vector<2x1x16xf32> to vector<2x16xf32>
    %189 = vector.shape_cast %188 : vector<2x16xf32> to vector<2x16x1xf32>
    %190 = vector.broadcast %189 : vector<2x16x1xf32> to vector<2x16x128xf32>
    %191 = arith.mulf %190, %186 : vector<2x16x128xf32>
    %cst_46 = arith.constant dense<0.000000e+00> : vector<2x128xf32>
    %192 = vector.multi_reduction <add>, %191, %cst_46 [1] : vector<2x16x128xf32> to vector<2x128xf32>
    %193 = vector.extract_strided_slice %112 {offsets = [0, 3, 0], sizes = [2, 1, 128], strides = [1, 1, 1]} : vector<2x8x128xf32> to vector<2x1x128xf32>
    %194 = vector.shape_cast %193 : vector<2x1x128xf32> to vector<2x128xf32>
    %195 = vector.shape_cast %194 : vector<2x128xf32> to vector<2x1x128xf32>
    %196 = vector.shape_cast %111 : vector<16x128xf32> to vector<1x16x128xf32>
    %197 = vector.broadcast %195 : vector<2x1x128xf32> to vector<2x16x128xf32>
    %198 = vector.broadcast %196 : vector<1x16x128xf32> to vector<2x16x128xf32>
    %199 = arith.mulf %197, %198 : vector<2x16x128xf32>
    %200 = math.exp %199 : vector<2x16x128xf32>
    %201 = arith.mulf %200, %186 : vector<2x16x128xf32>
    %202 = vector.extract_strided_slice %114 {offsets = [0, 3, 0], sizes = [2, 1, 128], strides = [1, 1, 1]} : vector<2x8x128xf32> to vector<2x1x128xf32>
    %203 = vector.shape_cast %202 : vector<2x1x128xf32> to vector<2x128xf32>
    %204 = vector.shape_cast %203 : vector<2x128xf32> to vector<2x1x128xf32>
    %205 = vector.extract_strided_slice %115 {offsets = [0, 3, 0], sizes = [2, 1, 16], strides = [1, 1, 1]} : vector<2x8x16xf32> to vector<2x1x16xf32>
    %206 = vector.shape_cast %205 : vector<2x1x16xf32> to vector<2x16xf32>
    %207 = vector.shape_cast %206 : vector<2x16xf32> to vector<2x16x1xf32>
    %208 = vector.broadcast %204 : vector<2x1x128xf32> to vector<2x16x128xf32>
    %209 = vector.broadcast %207 : vector<2x16x1xf32> to vector<2x16x128xf32>
    %210 = arith.mulf %208, %209 : vector<2x16x128xf32>
    %211 = arith.addf %201, %210 : vector<2x16x128xf32>
    %212 = vector.extract_strided_slice %116 {offsets = [0, 3, 0], sizes = [2, 1, 16], strides = [1, 1, 1]} : vector<2x8x16xf32> to vector<2x1x16xf32>
    %213 = vector.shape_cast %212 : vector<2x1x16xf32> to vector<2x16xf32>
    %214 = vector.shape_cast %213 : vector<2x16xf32> to vector<2x16x1xf32>
    %215 = vector.broadcast %214 : vector<2x16x1xf32> to vector<2x16x128xf32>
    %216 = arith.mulf %215, %211 : vector<2x16x128xf32>
    %cst_47 = arith.constant dense<0.000000e+00> : vector<2x128xf32>
    %217 = vector.multi_reduction <add>, %216, %cst_47 [1] : vector<2x16x128xf32> to vector<2x128xf32>
    %218 = vector.extract_strided_slice %112 {offsets = [0, 4, 0], sizes = [2, 1, 128], strides = [1, 1, 1]} : vector<2x8x128xf32> to vector<2x1x128xf32>
    %219 = vector.shape_cast %218 : vector<2x1x128xf32> to vector<2x128xf32>
    %220 = vector.shape_cast %219 : vector<2x128xf32> to vector<2x1x128xf32>
    %221 = vector.shape_cast %111 : vector<16x128xf32> to vector<1x16x128xf32>
    %222 = vector.broadcast %220 : vector<2x1x128xf32> to vector<2x16x128xf32>
    %223 = vector.broadcast %221 : vector<1x16x128xf32> to vector<2x16x128xf32>
    %224 = arith.mulf %222, %223 : vector<2x16x128xf32>
    %225 = math.exp %224 : vector<2x16x128xf32>
    %226 = arith.mulf %225, %211 : vector<2x16x128xf32>
    %227 = vector.extract_strided_slice %114 {offsets = [0, 4, 0], sizes = [2, 1, 128], strides = [1, 1, 1]} : vector<2x8x128xf32> to vector<2x1x128xf32>
    %228 = vector.shape_cast %227 : vector<2x1x128xf32> to vector<2x128xf32>
    %229 = vector.shape_cast %228 : vector<2x128xf32> to vector<2x1x128xf32>
    %230 = vector.extract_strided_slice %115 {offsets = [0, 4, 0], sizes = [2, 1, 16], strides = [1, 1, 1]} : vector<2x8x16xf32> to vector<2x1x16xf32>
    %231 = vector.shape_cast %230 : vector<2x1x16xf32> to vector<2x16xf32>
    %232 = vector.shape_cast %231 : vector<2x16xf32> to vector<2x16x1xf32>
    %233 = vector.broadcast %229 : vector<2x1x128xf32> to vector<2x16x128xf32>
    %234 = vector.broadcast %232 : vector<2x16x1xf32> to vector<2x16x128xf32>
    %235 = arith.mulf %233, %234 : vector<2x16x128xf32>
    %236 = arith.addf %226, %235 : vector<2x16x128xf32>
    %237 = vector.extract_strided_slice %116 {offsets = [0, 4, 0], sizes = [2, 1, 16], strides = [1, 1, 1]} : vector<2x8x16xf32> to vector<2x1x16xf32>
    %238 = vector.shape_cast %237 : vector<2x1x16xf32> to vector<2x16xf32>
    %239 = vector.shape_cast %238 : vector<2x16xf32> to vector<2x16x1xf32>
    %240 = vector.broadcast %239 : vector<2x16x1xf32> to vector<2x16x128xf32>
    %241 = arith.mulf %240, %236 : vector<2x16x128xf32>
    %cst_48 = arith.constant dense<0.000000e+00> : vector<2x128xf32>
    %242 = vector.multi_reduction <add>, %241, %cst_48 [1] : vector<2x16x128xf32> to vector<2x128xf32>
    %243 = vector.extract_strided_slice %112 {offsets = [0, 5, 0], sizes = [2, 1, 128], strides = [1, 1, 1]} : vector<2x8x128xf32> to vector<2x1x128xf32>
    %244 = vector.shape_cast %243 : vector<2x1x128xf32> to vector<2x128xf32>
    %245 = vector.shape_cast %244 : vector<2x128xf32> to vector<2x1x128xf32>
    %246 = vector.shape_cast %111 : vector<16x128xf32> to vector<1x16x128xf32>
    %247 = vector.broadcast %245 : vector<2x1x128xf32> to vector<2x16x128xf32>
    %248 = vector.broadcast %246 : vector<1x16x128xf32> to vector<2x16x128xf32>
    %249 = arith.mulf %247, %248 : vector<2x16x128xf32>
    %250 = math.exp %249 : vector<2x16x128xf32>
    %251 = arith.mulf %250, %236 : vector<2x16x128xf32>
    %252 = vector.extract_strided_slice %114 {offsets = [0, 5, 0], sizes = [2, 1, 128], strides = [1, 1, 1]} : vector<2x8x128xf32> to vector<2x1x128xf32>
    %253 = vector.shape_cast %252 : vector<2x1x128xf32> to vector<2x128xf32>
    %254 = vector.shape_cast %253 : vector<2x128xf32> to vector<2x1x128xf32>
    %255 = vector.extract_strided_slice %115 {offsets = [0, 5, 0], sizes = [2, 1, 16], strides = [1, 1, 1]} : vector<2x8x16xf32> to vector<2x1x16xf32>
    %256 = vector.shape_cast %255 : vector<2x1x16xf32> to vector<2x16xf32>
    %257 = vector.shape_cast %256 : vector<2x16xf32> to vector<2x16x1xf32>
    %258 = vector.broadcast %254 : vector<2x1x128xf32> to vector<2x16x128xf32>
    %259 = vector.broadcast %257 : vector<2x16x1xf32> to vector<2x16x128xf32>
    %260 = arith.mulf %258, %259 : vector<2x16x128xf32>
    %261 = arith.addf %251, %260 : vector<2x16x128xf32>
    %262 = vector.extract_strided_slice %116 {offsets = [0, 5, 0], sizes = [2, 1, 16], strides = [1, 1, 1]} : vector<2x8x16xf32> to vector<2x1x16xf32>
    %263 = vector.shape_cast %262 : vector<2x1x16xf32> to vector<2x16xf32>
    %264 = vector.shape_cast %263 : vector<2x16xf32> to vector<2x16x1xf32>
    %265 = vector.broadcast %264 : vector<2x16x1xf32> to vector<2x16x128xf32>
    %266 = arith.mulf %265, %261 : vector<2x16x128xf32>
    %cst_49 = arith.constant dense<0.000000e+00> : vector<2x128xf32>
    %267 = vector.multi_reduction <add>, %266, %cst_49 [1] : vector<2x16x128xf32> to vector<2x128xf32>
    %268 = vector.extract_strided_slice %112 {offsets = [0, 6, 0], sizes = [2, 1, 128], strides = [1, 1, 1]} : vector<2x8x128xf32> to vector<2x1x128xf32>
    %269 = vector.shape_cast %268 : vector<2x1x128xf32> to vector<2x128xf32>
    %270 = vector.shape_cast %269 : vector<2x128xf32> to vector<2x1x128xf32>
    %271 = vector.shape_cast %111 : vector<16x128xf32> to vector<1x16x128xf32>
    %272 = vector.broadcast %270 : vector<2x1x128xf32> to vector<2x16x128xf32>
    %273 = vector.broadcast %271 : vector<1x16x128xf32> to vector<2x16x128xf32>
    %274 = arith.mulf %272, %273 : vector<2x16x128xf32>
    %275 = math.exp %274 : vector<2x16x128xf32>
    %276 = arith.mulf %275, %261 : vector<2x16x128xf32>
    %277 = vector.extract_strided_slice %114 {offsets = [0, 6, 0], sizes = [2, 1, 128], strides = [1, 1, 1]} : vector<2x8x128xf32> to vector<2x1x128xf32>
    %278 = vector.shape_cast %277 : vector<2x1x128xf32> to vector<2x128xf32>
    %279 = vector.shape_cast %278 : vector<2x128xf32> to vector<2x1x128xf32>
    %280 = vector.extract_strided_slice %115 {offsets = [0, 6, 0], sizes = [2, 1, 16], strides = [1, 1, 1]} : vector<2x8x16xf32> to vector<2x1x16xf32>
    %281 = vector.shape_cast %280 : vector<2x1x16xf32> to vector<2x16xf32>
    %282 = vector.shape_cast %281 : vector<2x16xf32> to vector<2x16x1xf32>
    %283 = vector.broadcast %279 : vector<2x1x128xf32> to vector<2x16x128xf32>
    %284 = vector.broadcast %282 : vector<2x16x1xf32> to vector<2x16x128xf32>
    %285 = arith.mulf %283, %284 : vector<2x16x128xf32>
    %286 = arith.addf %276, %285 : vector<2x16x128xf32>
    %287 = vector.extract_strided_slice %116 {offsets = [0, 6, 0], sizes = [2, 1, 16], strides = [1, 1, 1]} : vector<2x8x16xf32> to vector<2x1x16xf32>
    %288 = vector.shape_cast %287 : vector<2x1x16xf32> to vector<2x16xf32>
    %289 = vector.shape_cast %288 : vector<2x16xf32> to vector<2x16x1xf32>
    %290 = vector.broadcast %289 : vector<2x16x1xf32> to vector<2x16x128xf32>
    %291 = arith.mulf %290, %286 : vector<2x16x128xf32>
    %cst_50 = arith.constant dense<0.000000e+00> : vector<2x128xf32>
    %292 = vector.multi_reduction <add>, %291, %cst_50 [1] : vector<2x16x128xf32> to vector<2x128xf32>
    %293 = vector.extract_strided_slice %112 {offsets = [0, 7, 0], sizes = [2, 1, 128], strides = [1, 1, 1]} : vector<2x8x128xf32> to vector<2x1x128xf32>
    %294 = vector.shape_cast %293 : vector<2x1x128xf32> to vector<2x128xf32>
    %295 = vector.shape_cast %294 : vector<2x128xf32> to vector<2x1x128xf32>
    %296 = vector.shape_cast %111 : vector<16x128xf32> to vector<1x16x128xf32>
    %297 = vector.broadcast %295 : vector<2x1x128xf32> to vector<2x16x128xf32>
    %298 = vector.broadcast %296 : vector<1x16x128xf32> to vector<2x16x128xf32>
    %299 = arith.mulf %297, %298 : vector<2x16x128xf32>
    %300 = math.exp %299 : vector<2x16x128xf32>
    %301 = arith.mulf %300, %286 : vector<2x16x128xf32>
    %302 = vector.extract_strided_slice %114 {offsets = [0, 7, 0], sizes = [2, 1, 128], strides = [1, 1, 1]} : vector<2x8x128xf32> to vector<2x1x128xf32>
    %303 = vector.shape_cast %302 : vector<2x1x128xf32> to vector<2x128xf32>
    %304 = vector.shape_cast %303 : vector<2x128xf32> to vector<2x1x128xf32>
    %305 = vector.extract_strided_slice %115 {offsets = [0, 7, 0], sizes = [2, 1, 16], strides = [1, 1, 1]} : vector<2x8x16xf32> to vector<2x1x16xf32>
    %306 = vector.shape_cast %305 : vector<2x1x16xf32> to vector<2x16xf32>
    %307 = vector.shape_cast %306 : vector<2x16xf32> to vector<2x16x1xf32>
    %308 = vector.broadcast %304 : vector<2x1x128xf32> to vector<2x16x128xf32>
    %309 = vector.broadcast %307 : vector<2x16x1xf32> to vector<2x16x128xf32>
    %310 = arith.mulf %308, %309 : vector<2x16x128xf32>
    %311 = arith.addf %301, %310 : vector<2x16x128xf32>
    %312 = vector.extract_strided_slice %116 {offsets = [0, 7, 0], sizes = [2, 1, 16], strides = [1, 1, 1]} : vector<2x8x16xf32> to vector<2x1x16xf32>
    %313 = vector.shape_cast %312 : vector<2x1x16xf32> to vector<2x16xf32>
    %314 = vector.shape_cast %313 : vector<2x16xf32> to vector<2x16x1xf32>
    %315 = vector.broadcast %314 : vector<2x16x1xf32> to vector<2x16x128xf32>
    %316 = arith.mulf %315, %311 : vector<2x16x128xf32>
    %cst_51 = arith.constant dense<0.000000e+00> : vector<2x128xf32>
    %317 = vector.multi_reduction <add>, %316, %cst_51 [1] : vector<2x16x128xf32> to vector<2x128xf32>
    %318 = vector.shape_cast %142 : vector<2x128xf32> to vector<2x1x128xf32>
    %319 = vector.shape_cast %167 : vector<2x128xf32> to vector<2x1x128xf32>
    %320 = vector.shape_cast %192 : vector<2x128xf32> to vector<2x1x128xf32>
    %321 = vector.shape_cast %217 : vector<2x128xf32> to vector<2x1x128xf32>
    %322 = vector.shape_cast %242 : vector<2x128xf32> to vector<2x1x128xf32>
    %323 = vector.shape_cast %267 : vector<2x128xf32> to vector<2x1x128xf32>
    %324 = vector.shape_cast %292 : vector<2x128xf32> to vector<2x1x128xf32>
    %325 = vector.shape_cast %317 : vector<2x128xf32> to vector<2x1x128xf32>
    %326 = tpu.concatenate %318, %319, %320, %321, %322, %323, %324, %325 in 1 : vector<2x1x128xf32>, vector<2x1x128xf32>, vector<2x1x128xf32>, vector<2x1x128xf32>, vector<2x1x128xf32>, vector<2x1x128xf32>, vector<2x1x128xf32>, vector<2x1x128xf32> -> vector<2x8x128xf32>
    %c0_52 = arith.constant 0 : index
    %c0_53 = arith.constant 0 : index
    %c0_54 = arith.constant 0 : index
    %327 = vector.load %arg18[%c0_52, %c0_53, %c0_54] : memref<2x8x128xf32, #tpu.memory_space<vmem>>, vector<2x8x128xf32>
    tpu.vector_store %arg18[%c0_52, %c0_53, %c0_54], %326 {strides = array<i32>} : memref<2x8x128xf32, #tpu.memory_space<vmem>>, vector<2x8x128xf32>,
    %c0_55 = arith.constant 0 : index
    %c0_56 = arith.constant 0 : index
    %c0_57 = arith.constant 0 : index
    %328 = vector.load %arg18[%c0_55, %c0_56, %c0_57] : memref<2x8x128xf32, #tpu.memory_space<vmem>>, vector<2x8x128xf32>
    %329 = vector.shape_cast %328 : vector<2x8x128xf32> to vector<16x128xf32>
    %c0_58 = arith.constant 0 : index
    %c0_59 = arith.constant 0 : index
    %c0_60 = arith.constant 0 : index
    %330 = vector.load %arg12[%c0_58, %c0_59, %c0_60] : memref<1x1x128xf32, #tpu.memory_space<vmem>>, vector<1x1x128xf32>
    %331 = vector.shape_cast %330 : vector<1x1x128xf32> to vector<1x128xf32>
    %332 = vector.broadcast %331 : vector<1x128xf32> to vector<16x128xf32>
    %333 = arith.mulf %332, %88 : vector<16x128xf32>
    %334 = arith.addf %329, %333 : vector<16x128xf32>
    %cst_61 = arith.constant 0.000000e+00 : f32
    %335 = vector.broadcast %cst_61 : f32 to vector<16x128xf32>
    %336 = arith.subf %335, %23 : vector<16x128xf32>
    %337 = math.exp %336 : vector<16x128xf32>
    %cst_62 = arith.constant 1.000000e+00 : f32
    %338 = vector.broadcast %cst_62 : f32 to vector<16x128xf32>
    %339 = arith.addf %338, %337 : vector<16x128xf32>
    %340 = arith.divf %23, %339 : vector<16x128xf32>
    %341 = arith.mulf %334, %340 : vector<16x128xf32>
    %342 = arith.truncf %341 : vector<16x128xf32> to vector<16x128xbf16>
    %c0_63 = arith.constant 0 : index
    %c0_64 = arith.constant 0 : index
    %c0_65 = arith.constant 0 : index
    %343 = vector.load %arg13[%c0_63, %c0_64, %c0_65] : memref<1x128x128xbf16, #tpu.memory_space<vmem>>, vector<1x128x128xbf16>
    %344 = vector.shape_cast %343 : vector<1x128x128xbf16> to vector<128x128xbf16>
    %cst_66 = arith.constant dense<0.000000e+00> : vector<16x128xf32>
    %345 = tpu.matmul %342, %344, %cst_66 {dimension_numbers = #tpu.dot_dimension_numbers<[1], [0], [0], [1], [0, 0, 1, 1], [], []>} : vector<16x128xbf16>, vector<128x128xbf16>, vector<16x128xf32> -> vector<16x128xf32>
    %346 = arith.addf %3, %345 : vector<16x128xf32>
    %c0_67 = arith.constant 0 : index
    %c0_68 = arith.constant 0 : index
    %347 = vector.load %arg17[%c0_67, %c0_68] : memref<16x128xf32, #tpu.memory_space<vmem>>, vector<16x128xf32>
    tpu.vector_store %arg17[%c0_67, %c0_68], %346 {strides = array<i32>} : memref<16x128xf32, #tpu.memory_space<vmem>>, vector<16x128xf32>,
    %c1_i32_69 = arith.constant 1 : i32
    %348 = arith.cmpi eq, %arg1, %c1_i32_69 : i32
    %349 = arith.extui %348 : i1 to i32
    %c0_i32_70 = arith.constant 0 : i32
    %350 = arith.cmpi ne, %349, %c0_i32_70 : i32
    scf.if %350 {
      %351 = arith.truncf %346 : vector<16x128xf32> to vector<16x128xbf16>
      %c0_71 = arith.constant 0 : index
      %c0_72 = arith.constant 0 : index
      %352 = vector.load %arg14[%c0_71, %c0_72] : memref<128x128xbf16, #tpu.memory_space<vmem>>, vector<128x128xbf16>
      %cst_73 = arith.constant dense<0.000000e+00> : vector<16x128xf32>
      %353 = tpu.matmul %351, %352, %cst_73 {dimension_numbers = #tpu.dot_dimension_numbers<[1], [0], [0], [1], [0, 0, 1, 1], [], []>} : vector<16x128xbf16>, vector<128x128xbf16>, vector<16x128xf32> -> vector<16x128xf32>
      %c0_74 = arith.constant 0 : index
      %c0_75 = arith.constant 0 : index
      %354 = vector.load %arg15[%c0_74, %c0_75] : memref<1x128xf32, #tpu.memory_space<vmem>>, vector<1x128xf32>
      %355 = vector.broadcast %354 : vector<1x128xf32> to vector<16x128xf32>
      %356 = arith.addf %353, %355 : vector<16x128xf32>
      %357 = math.tanh %356 : vector<16x128xf32>
      %c0_76 = arith.constant 0 : index
      %c0_77 = arith.constant 0 : index
      %358 = vector.load %arg16[%c0_76, %c0_77] : memref<16x128xf32, #tpu.memory_space<vmem>>, vector<16x128xf32>
      tpu.vector_store %arg16[%c0_76, %c0_77], %357 {strides = array<i32>} : memref<16x128xf32, #tpu.memory_space<vmem>>, vector<16x128xf32>,
    } else {
    }
    return
  }
  func.func @transform_0(%arg0: i32, %arg1: i32) -> (i32, i32) {
    %c0_i32 = arith.constant 0 : i32
    %c0_i32_0 = arith.constant 0 : i32
    return %arg0, %c0_i32 : i32, i32
  }
  func.func @transform_1(%arg0: i32, %arg1: i32) -> (i32, i32) {
    %c0_i32 = arith.constant 0 : i32
    %c0_i32_0 = arith.constant 0 : i32
    %c0_i32_1 = arith.constant 0 : i32
    return %c0_i32, %c0_i32_0 : i32, i32
  }
  func.func @transform_2(%arg0: i32, %arg1: i32) -> (i32, i32) {
    %c0_i32 = arith.constant 0 : i32
    %c0_i32_0 = arith.constant 0 : i32
    %c0_i32_1 = arith.constant 0 : i32
    return %c0_i32, %c0_i32_0 : i32, i32
  }
  func.func @transform_3(%arg0: i32, %arg1: i32) -> (i32, i32, i32) {
    %c0_i32 = arith.constant 0 : i32
    %c0_i32_0 = arith.constant 0 : i32
    %c0_i32_1 = arith.constant 0 : i32
    return %arg1, %c0_i32, %c0_i32_0 : i32, i32, i32
  }
  func.func @transform_4(%arg0: i32, %arg1: i32) -> (i32, i32, i32) {
    %c0_i32 = arith.constant 0 : i32
    %c0_i32_0 = arith.constant 0 : i32
    %c0_i32_1 = arith.constant 0 : i32
    return %arg1, %c0_i32, %c0_i32_0 : i32, i32, i32
  }
  func.func @transform_5(%arg0: i32, %arg1: i32) -> (i32, i32, i32) {
    %c0_i32 = arith.constant 0 : i32
    %c0_i32_0 = arith.constant 0 : i32
    %c0_i32_1 = arith.constant 0 : i32
    return %arg1, %c0_i32, %c0_i32_0 : i32, i32, i32
  }
  func.func @transform_6(%arg0: i32, %arg1: i32) -> (i32, i32, i32) {
    %c0_i32 = arith.constant 0 : i32
    %c0_i32_0 = arith.constant 0 : i32
    %c0_i32_1 = arith.constant 0 : i32
    return %arg1, %c0_i32, %c0_i32_0 : i32, i32, i32
  }
  func.func @transform_7(%arg0: i32, %arg1: i32) -> (i32, i32, i32) {
    %c0_i32 = arith.constant 0 : i32
    %c0_i32_0 = arith.constant 0 : i32
    %c0_i32_1 = arith.constant 0 : i32
    return %arg1, %c0_i32, %c0_i32_0 : i32, i32, i32
  }
  func.func @transform_8(%arg0: i32, %arg1: i32) -> (i32, i32, i32) {
    %c0_i32 = arith.constant 0 : i32
    %c0_i32_0 = arith.constant 0 : i32
    %c0_i32_1 = arith.constant 0 : i32
    return %arg1, %c0_i32, %c0_i32_0 : i32, i32, i32
  }
  func.func @transform_9(%arg0: i32, %arg1: i32) -> (i32, i32, i32) {
    %c0_i32 = arith.constant 0 : i32
    %c0_i32_0 = arith.constant 0 : i32
    %c0_i32_1 = arith.constant 0 : i32
    return %arg1, %c0_i32, %c0_i32_0 : i32, i32, i32
  }
  func.func @transform_10(%arg0: i32, %arg1: i32) -> (i32, i32, i32) {
    %c0_i32 = arith.constant 0 : i32
    %c0_i32_0 = arith.constant 0 : i32
    %c0_i32_1 = arith.constant 0 : i32
    return %arg1, %c0_i32, %c0_i32_0 : i32, i32, i32
  }
  func.func @transform_11(%arg0: i32, %arg1: i32) -> (i32, i32, i32) {
    %c0_i32 = arith.constant 0 : i32
    %c0_i32_0 = arith.constant 0 : i32
    %c0_i32_1 = arith.constant 0 : i32
    return %arg1, %c0_i32, %c0_i32_0 : i32, i32, i32
  }
  func.func @transform_12(%arg0: i32, %arg1: i32) -> (i32, i32) {
    %c0_i32 = arith.constant 0 : i32
    %c0_i32_0 = arith.constant 0 : i32
    %c0_i32_1 = arith.constant 0 : i32
    return %c0_i32, %c0_i32_0 : i32, i32
  }
  func.func @transform_13(%arg0: i32, %arg1: i32) -> (i32, i32) {
    %c0_i32 = arith.constant 0 : i32
    %c0_i32_0 = arith.constant 0 : i32
    %c0_i32_1 = arith.constant 0 : i32
    return %c0_i32, %c0_i32_0 : i32, i32
  }
  func.func @transform_14(%arg0: i32, %arg1: i32) -> (i32, i32) {
    %c0_i32 = arith.constant 0 : i32
    %c0_i32_0 = arith.constant 0 : i32
    return %arg0, %c0_i32 : i32, i32
  }
}

</mosaic_0001>

<bundles_post_ra>
// kernel: net_forward.1
= control target key start
LH: loop header
LB: loop body
LE: loop exit
PB: predicated region body
PF: predicated region fallthrough
CT: control target
= control target key end

     0   :  { %s2811_s29 = smov 0   ;;  %s2813_s30 = smov 0   ;;  %s3476_s0 = inlined_call_operand.vmem [shape: f32[16,4], index: 0, kind: input, shape index: {}]   ;;  %s3477_s1 = inlined_call_operand.vmem [shape: bf16[4,128], index: 1, kind: input, shape index: {}]   ;;  %s3478_s2 = inlined_call_operand.vmem [shape: f32[1,128], index: 2, kind: input, shape index: {}]   ;;  %s3479_s3 = inlined_call_operand.vmem [shape: f32[2,1,128], index: 3, kind: input, shape index: {}]   ;;  %s3480_s4 = inlined_call_operand.vmem [shape: bf16[2,128,256], index: 4, kind: input, shape index: {}]   ;;  %s3481_s5 = inlined_call_operand.vmem [shape: f32[2,4,128], index: 5, kind: input, shape index: {}]   ;;  %s3482_s6 = inlined_call_operand.vmem [shape: f32[2,1,128], index: 6, kind: input, shape index: {}]   ;;  %s3483_s7 = inlined_call_operand.vmem [shape: bf16[2,128,256], index: 7, kind: input, shape index: {}]   ;;  %s3484_s8 = inlined_call_operand.vmem [shape: f32[2,1,128], index: 8, kind: input, shape index: {}]   ;;  %s3485_s9 = inlined_call_operand.vmem [shape: f32[2,16,128], index: 9, kind: input, shape index: {}]   ;;  %s3486_s10 = inlined_call_operand.vmem [shape: f32[2,1,128], index: 10, kind: input, shape index: {}]   ;;  %s3487_s11 = inlined_call_operand.vmem [shape: bf16[2,128,128], index: 11, kind: input, shape index: {}]   ;;  %s3488_s12 = inlined_call_operand.vmem [shape: bf16[128,128], index: 12, kind: input, shape index: {}]   ;;  %s3489_s13 = inlined_call_operand.vmem [shape: f32[1,128], index: 13, kind: input, shape index: {}]   ;;  %s3490_s14 = inlined_call_operand.vmem [shape: f32[16,128], index: 14, kind: output, shape index: {}]  }
   0x1   :  { %3495 = sst [smem:[#allocation7_spill]] %s3480_s4  ;;  %s2815_s15 = smov 0  }
   0x2   :  { %3496 = sst [smem:[#allocation8_spill]] %s3481_s5 }
   0x3   :  { %3497 = sst [smem:[#allocation9_spill]] %s3488_s12 }
   0x4   :  { %3498 = sst [smem:[#allocation10_spill]] %s3489_s13 }
   0x5   :  { %3499 = sst [smem:[#allocation11_spill]] %s3490_s14 }
   0x6 LB: > { %3500 = sst [smem:[#allocation4_spill]] %s2723_s30  ;;  %s33_s16 = sadd.s32 1, %s2723_s30  ;;  %s2727_s15 = sphi %s2815_s15, %s24_s15   ;;  %s2723_s30 = sphi %s2813_s30, %s3514_s30   ;;  %s2719_s29 = sphi %s2811_s29, %s3513_s29  }
   0x7   : > { %3501 = sst [smem:[#allocation5_spill]] %s2727_s15  ;;  %p2371_p0 = scmp.ge.s32.totalorder %s2727_s15, 1 }
   0x8   : > { %p34_p1 = scmp.ge.s32.totalorder %s33_s16, 2  ;;  %p506_p2 = scmp.lt.s32.totalorder %s2727_s15, 3 }
   0xa   : > { %s3516_s16 = smov (%p34_p1, %s33_s16), 0  ;;  %p507_p3 = pnand %p2371_p0, %p506_p2 }
   0xb   : > { %3502 = sst [smem:[#allocation6_spill]] %s3516_s16  ;;  %p594_p4 = scmp.lt.s32.totalorder (!%p507_p3), %s2719_s29, 1 }
   0xc   : > { %510 = sbr.rel (%p507_p3) target bundleno = 1612 (0x64c), region = 76  ;;  %s3503_s4 = sld [smem:[#allocation7_spill]] (!%p507_p3) }
   0xd   : > { %s3504_s5 = sld [smem:[#allocation8_spill]] (!%p507_p3)  ;;  %p2381_p5 = scmp.ne.s32.totalorder (!%p507_p3), %s2719_s29, 0 }
  0x13   : > { %s2833_s17 = scalar_select %p594_p4, %s2719_s29, 1 }
  0x14   : > { %640 = sbr.rel (%p2381_p5) target bundleno = 242 (0xf2), region = 80  ;;  %v644_v0 = vld [vmem:[%s3477_s1] sm:$0x3] (!%p2381_p5)  ;;  %vm656_vm0 = vcmask (!%p2381_p5), 1041408   ;;  %v2729_v2 = vmov (!%p2381_p5), 0.0   ;;  %vm2730_vm1 = vmmov (!%p2381_p5), 0  }
  0x15   : > { %s2442_s21 = sshll.u32 %s2833_s17, 7  ;;  %s2374_s25 = sshll.u32 %s2833_s17, 2  ;;  %v641_v1 = vld [vmem:[%s3476_s0] sm:$0xff] (!%p2381_p5)  ;;  %2466 = vmatprep.subr.bf16.mxu0 (!%p2381_p5), %v2729_v2  ;;  %v658_v3 = vsel (!%p2381_p5), %vm656_vm0, %v644_v0, 0  ;;  %2468 = vmatprep.mubr.msk.bf16.mxu0 (!%p2381_p5), %vm2730_vm1, %v2729_v2  ;;  %v642_v4 = vld [vmem:[%s3476_s0 + $0x8] sm:$0xff] (!%p2381_p5)  ;;  %vm652_vm2 = vcmask (!%p2381_p5), 31744  }
  0x16   : > { %s2843_s24 = scalar_lea.vmem %s3503_s4, %s2442_s21  ;;  %s2849_s28 = scalar_lea.vmem %s3504_s5, %s2374_s25  ;;  %2467 = vmatpush3.bf16.msra.mxu0 (!%p2381_p5), %v658_v3  ;;  %v643_v5 = vpack.c.bf16 (!%p2381_p5), %v642_v4, %v641_v1  ;;  %v2382_v6 = vld [vmem:[%s3478_s2] ss:$0 sm:$0xff] (!%p2381_p5) }
  0x17   : > { %s2858_s20 = scalar_lea.vmem %s3483_s7, %s2442_s21  ;;  %s616_s22 = scalar_lea.vmem %s3484_s8, %s2833_s17 }
  0x18   : > { %s2444_s23 = sshll.u32 %s2833_s17, 4  ;;  %s624_s26 = scalar_lea.vmem %s3486_s10, %s2833_s17 }
  0x19   : > { %s2872_s5 = scalar_lea.vmem %s3485_s9, %s2444_s23  ;;  %s2445_s18 = sshll.u32 %s2833_s17, 6  ;;  %2469 = vmatmul.mubr.msk.bf16.vlgmr.msra.gmra.mrb[0].mxu0 (!%p2381_p5), %vm652_vm2, %v643_v5 }
  0x1a   : > { %s2878_s30 = scalar_lea.vmem %s3487_s11, %s2445_s18 }
  0xec   : > { %v694_v7 = vpop.f32.mrb[0].mxu0 }
  0xed   : > { %v695_v8 = vadd.f32 %v2382_v6, %v694_v7  ;;  %v2470_v9 = vpop.f32.mrb[1].mxu0 }
  0xee   : > { %v697_v10 = vpop.f32.mrb[2].mxu0 }
  0xef   : > { %701 = vst [vmem:[#allocation2] sm:$0xff] %v695_v8  ;;  %v698_v11 = vadd.f32 %v2382_v6, %v697_v10  ;;  %v2471_v12 = vpop.f32.mrb[3].mxu0 }
  0xf1   : > { %702 = vst [vmem:[#allocation2 + $0x8] sm:$0xff] %v698_v11 }
  0xf2 PF: > { %v2543_v16 = vld [vmem:[%s2843_s24 + $0x4] ss:$8 sps:$4 sm:$0xff]   ;;  %v2545_v17 = vld [vmem:[%s2843_s24] ss:$8 sps:$4 sm:$0xff]   ;;  %v2546_v18 = vld [vmem:[%s2843_s24 + $0x14] ss:$8 sps:$4 sm:$0xff]   ;;  %s3505_s27 = scalar_lea.vmem %s3479_s3, %s2833_s17  ;;  %v869_v0 = vlaneseq  ;;  %s3506_s18 = scalar_lea.vmem %s3482_s6, %s2833_s17 }
  0xf3   : > { %825 = vmatprep.subr.bf16.mxu0 %v2543_v16  ;;  %v2548_v20 = vld [vmem:[%s2843_s24 + $0x10] ss:$8 sps:$4 sm:$0xff]   ;;  %v2549_v21 = vld [vmem:[%s2843_s24 + $0x24] ss:$8 sps:$4 sm:$0xff]   ;;  %v2551_v22 = vld [vmem:[%s2843_s24 + $0x20] ss:$8 sps:$4 sm:$0xff]  }
  0xf4   : > { %826 = vmatpush1.bf16.msra.mxu0 %v2545_v17  ;;  %v2552_v23 = vld [vmem:[%s2843_s24 + $0x34] ss:$8 sps:$4 sm:$0xff]   ;;  %v2554_v24 = vld [vmem:[%s2843_s24 + $0x30] ss:$8 sps:$4 sm:$0xff]   ;;  %v2555_v25 = vld [vmem:[%s2843_s24 + $0x44] ss:$8 sps:$4 sm:$0xff]  }
  0xf5   : > { %827 = vmatprep.subr.bf16.mxu0 %v2546_v18  ;;  %v2557_v26 = vld [vmem:[%s2843_s24 + $0x40] ss:$8 sps:$4 sm:$0xff]   ;;  %v2558_v27 = vld [vmem:[%s2843_s24 + $0x54] ss:$8 sps:$4 sm:$0xff]   ;;  %v2560_v28 = vld [vmem:[%s2843_s24 + $0x50] ss:$8 sps:$4 sm:$0xff]  }
  0xf6   : > { %v703_v13 = vld [vmem:[#allocation2] sm:$0xff]  ;;  %v2731_v30 = vmov 0   ;;  %v2564_v32 = vld [vmem:[%s2843_s24 + $0x74] ss:$8 sps:$4 sm:$0xff]   ;;  %v2566_v33 = vld [vmem:[%s2843_s24 + $0x70] ss:$8 sps:$4 sm:$0xff]  }
  0xf7   : > { %v705_v15 = vmul.f32 %v703_v13, %v703_v13  ;;  %v2561_v29 = vld [vmem:[%s2843_s24 + $0x64] ss:$8 sps:$4 sm:$0xff]   ;;  %857 = vmatprep.mubr.bf16.mxu0 %v2731_v30  ;;  %1115 = vmatprep.mubr.bf16.mxu1 %v2731_v30  ;;  %v2563_v31 = vld [vmem:[%s2843_s24 + $0x60] ss:$8 sps:$4 sm:$0xff]   ;;  %v2570_v50 = vld [vmem:[%s2858_s20 + $0x14] ss:$8 sps:$4 sm:$0xff]  }
  0xf8   : > { %v704_v14 = vld [vmem:[#allocation2 + $0x8] sm:$0xff]  ;;  %828 = vmatpush1.bf16.msra.mxu0 %v2548_v20  ;;  %v2384_v43 = vld [vmem:[%s3505_s27] ss:$0 sm:$0xff]  ;;  %v2572_v51 = vld [vmem:[%s2858_s20 + $0x10] ss:$8 sps:$4 sm:$0xff]   ;;  %v2930_v1 = vshrl.u32 %v869_v0, 7 }
  0xf9   : > { %707 = vadd.xlane.f32.xlu0 %v705_v15  ;;  %v706_v19 = vmul.f32 %v704_v14, %v704_v14  ;;  %829 = vmatprep.subr.bf16.mxu0 %v2549_v21  ;;  %v2567_v48 = vld [vmem:[%s2858_s20 + $0x4] ss:$8 sps:$4 sm:$0xff]   ;;  %v2569_v49 = vld [vmem:[%s2858_s20] ss:$8 sps:$4 sm:$0xff]   ;;  %v2576_v54 = vld [vmem:[%s2858_s20 + $0x34] ss:$8 sps:$4 sm:$0xff]  }
  0xfa   : > { %1083 = vmatprep.subr.bf16.mxu1 %v2567_v48  ;;  %v2573_v52 = vld [vmem:[%s2858_s20 + $0x24] ss:$8 sps:$4 sm:$0xff]   ;;  %v2575_v53 = vld [vmem:[%s2858_s20 + $0x20] ss:$8 sps:$4 sm:$0xff]   ;;  %v2578_v55 = vld [vmem:[%s2858_s20 + $0x30] ss:$8 sps:$4 sm:$0xff]  }
  0xfb   : > { %1084 = vmatpush1.bf16.msra.mxu1 %v2569_v49  ;;  %v2579_v56 = vld [vmem:[%s2858_s20 + $0x44] ss:$8 sps:$4 sm:$0xff]   ;;  %v2581_v57 = vld [vmem:[%s2858_s20 + $0x40] ss:$8 sps:$4 sm:$0xff]   ;;  %v2582_v58 = vld [vmem:[%s2858_s20 + $0x54] ss:$8 sps:$4 sm:$0xff]  }
  0xfc   : > { %830 = vmatpush1.bf16.msra.mxu0 %v2551_v22  ;;  %1085 = vmatprep.subr.bf16.mxu1 %v2570_v50  ;;  %v2584_v59 = vld [vmem:[%s2858_s20 + $0x50] ss:$8 sps:$4 sm:$0xff]   ;;  %v2585_v60 = vld [vmem:[%s2858_s20 + $0x64] ss:$8 sps:$4 sm:$0xff]   ;;  %v2587_v61 = vld [vmem:[%s2858_s20 + $0x60] ss:$8 sps:$4 sm:$0xff]  }
  0xfd   : > { %709 = vadd.xlane.f32.xlu0 %v706_v19  ;;  %831 = vmatprep.subr.bf16.mxu0 %v2552_v23  ;;  %v2588_v62 = vld [vmem:[%s2858_s20 + $0x74] ss:$8 sps:$4 sm:$0xff]   ;;  %v2590_v63 = vld [vmem:[%s2858_s20 + $0x70] ss:$8 sps:$4 sm:$0xff]   ;;  %v871_v2 = vadd.s32 8, %v2930_v1  ;;  %v2934_v3 = vsub.s32 3, %v2930_v1 }
  0xfe   : > { %v868_v4 = vld [vmem:[%s2849_s28] sm:$0xf]  ;;  %v876_v5 = vand.u32 7, %v2930_v1  ;;  %v2939_v7 = vsub.s32 2, %v2930_v1  ;;  %v2942_v8 = vsub.s32 1, %v2930_v1  ;;  %vm904_vm3 = vcmp.lt.s32.totalorder %v2930_v1, 1 }
  0xff   : > { %1086 = vmatpush1.bf16.msra.mxu1 %v2572_v51  ;;  %v883_v6 = vand.u32 7, %v871_v2  ;;  %v899_v10 = vrot.slane %v868_v4, %v2934_v3  ;;  %vm925_vm4 = vcmp.lt.s32.totalorder %v2930_v1, 2  ;;  %v2948_v11 = vsub.s32 0, %v2930_v1  ;;  %v2401_v48 = vld [vmem:[%s3506_s18] ss:$0 sm:$0xff]  ;;  %p2428_p6 = scmp.ne.s32.totalorder %s2719_s29, 1 }
 0x100   : > { %832 = vmatpush1.bf16.msra.mxu0 %v2554_v24  ;;  %1087 = vmatprep.subr.bf16.mxu1 %v2573_v52  ;;  %vm907_vm5 = vcmp.ge.s32.totalorder %v876_v5, 1  ;;  %vm928_vm7 = vcmp.ge.s32.totalorder %v876_v5, 2  ;;  %v939_v15 = vrot.slane %v868_v4, %v2942_v8  ;;  %vm946_vm9 = vcmp.lt.s32.totalorder %v2930_v1, 3 }
 0x101   : > { %833 = vmatprep.subr.bf16.mxu0 %v2555_v25  ;;  %vm908_vm6 = vcmp.ge.s32.totalorder %v883_v6, 1  ;;  %vm929_vm8 = vcmp.ge.s32.totalorder %v883_v6, 2  ;;  %vm949_vm10 = vcmp.ge.s32.totalorder %v876_v5, 3  ;;  %vm950_vm11 = vcmp.ge.s32.totalorder %v883_v6, 3 }
 0x102   : > { %v960_v23 = vrot.slane %v868_v4, %v2948_v11  ;;  %vm2733_vm12 = vmmov 0   ;;  %vm1925_vm13 = vcmask 1040384   ;;  %vm1928_vm14 = vcmask 1041408  }
 0x103   : > { %1088 = vmatpush1.bf16.msra.mxu1 %v2575_v53  ;;  %vm1931_vm15 = vcmask 1042432   ;;  %vm1934_vm0 = vcmask 1043456   ;;  %vm1937_vm1 = vcmask 1044480   ;;  %vm1940_vm2 = vcmask 1045504  }
 0x104   : > { %834 = vmatpush1.bf16.msra.mxu0 %v2557_v26  ;;  %1089 = vmatprep.subr.bf16.mxu1 %v2576_v54 }
 0x105   : > { %835 = vmatprep.subr.bf16.mxu0 %v2558_v27 }
 0x107   : > { %1090 = vmatpush1.bf16.msra.mxu1 %v2578_v55 }
 0x108   : > { %836 = vmatpush1.bf16.msra.mxu0 %v2560_v28  ;;  %1091 = vmatprep.subr.bf16.mxu1 %v2579_v56 }
 0x109   : > { %837 = vmatprep.subr.bf16.mxu0 %v2561_v29 }
 0x10b   : > { %1092 = vmatpush1.bf16.msra.mxu1 %v2581_v57 }
 0x10c   : > { %838 = vmatpush1.bf16.msra.mxu0 %v2563_v31  ;;  %1093 = vmatprep.subr.bf16.mxu1 %v2582_v58 }
 0x10d   : > { %839 = vmatprep.subr.bf16.mxu0 %v2564_v32 }
 0x10f   : > { %1094 = vmatpush1.bf16.msra.mxu1 %v2584_v59 }
 0x110   : > { %840 = vmatpush1.bf16.msra.mxu0 %v2566_v33  ;;  %1095 = vmatprep.subr.bf16.mxu1 %v2585_v60 }
 0x113   : > { %1096 = vmatpush1.bf16.msra.mxu1 %v2587_v61 }
 0x114   : > { %1097 = vmatprep.subr.bf16.mxu1 %v2588_v62 }
 0x117   : > { %1098 = vmatpush1.bf16.msra.mxu1 %v2590_v63 }
 0x186   : > { %v708_v34 = vpop.xlane.xlu0 %707 }
 0x187   : > { %v711_v35 = vmul.f32 0.03125, %v708_v34 }
 0x189   : > { %v713_v36 = vadd.f32 1e-05, %v711_v35 }
 0x18a   : > { %v710_v37 = vpop.xlane.xlu0 %709 }
 0x18b   : > { %2599 = vrsqrt.f32 %v713_v36  ;;  %v712_v38 = vmul.f32 0.03125, %v710_v37 }
 0x18d   : > { %v714_v39 = vadd.f32 1e-05, %v712_v38 }
 0x18f   : > { %2601 = vrsqrt.f32 %v714_v39 }
 0x195   : > { %v2600_v40 = vpop.eup %2599 }
 0x196   : > { %v717_v41 = vmul.f32 %v2600_v40, %v703_v13  ;;  %v918_v13 = vrot.slane %v868_v4, %v2939_v7  ;;  %v2418_v4 = vld [vmem:[%s616_s22] ss:$0 sm:$0xff]  ;;  %s3509_s22 = sld [smem:[#allocation10_spill]] (!%p2428_p6) }
 0x198   : > { %v726_v45 = vmul.f32 %v2384_v43, %v717_v41 }
 0x199   : > { %v2602_v42 = vpop.eup %2601 }
 0x19a   : > { %v718_v44 = vmul.f32 %v2602_v42, %v704_v14 }
 0x19c   : > { %v727_v46 = vmul.f32 %v2384_v43, %v718_v44 }
 0x19e   : > { %v728_v47 = vpack.c.bf16 %v727_v46, %v726_v45 }
 0x1a0   : > { %858 = vmatmul.mubr.bf16.vlgmr.msra.gmra.mrb[0].mxu0 %v728_v47 }
 0x273   : > { %v859_v9 = vpop.f32.mrb[0].mxu0 }
 0x274   : > { %v2950_v12 = vpop.f32.mrb[1].mxu0  ;;  %v902_v16 = vrot.slane %v859_v9, 7  ;;  %v923_v17 = vrot.slane %v859_v9, 6  ;;  %v900_v21 = vmul.f32 %v899_v10, %v859_v9  ;;  %v944_v28 = vrot.slane %v859_v9, 5 }
 0x275   : > { %v863_v14 = vpop.f32.mrb[2].mxu0 }
 0x276   : > { %v903_v18 = vrot.slane %v863_v14, 7  ;;  %v924_v19 = vrot.slane %v863_v14, 6  ;;  %v2955_v20 = vpop.f32.mrb[3].mxu0  ;;  %v945_v22 = vrot.slane %v863_v14, 5  ;;  %v901_v32 = vmul.f32 %v899_v10, %v863_v14 }
 0x278   : > { %v905_v24 = vsel %vm904_vm3, %v902_v16, %v903_v18  ;;  %v906_v25 = vsel %vm904_vm3, %v903_v18, %v902_v16  ;;  %v926_v26 = vsel %vm925_vm4, %v923_v17, %v924_v19  ;;  %v927_v27 = vsel %vm925_vm4, %v924_v19, %v923_v17 }
 0x279   : > { %v913_v29 = vsel %vm907_vm5, %v906_v25, 0.0  ;;  %v914_v30 = vsel %vm908_vm6, %v905_v24, 0.0  ;;  %v934_v31 = vsel %vm928_vm7, %v927_v27, 0.0  ;;  %v935_v35 = vsel %vm929_vm8, %v926_v26, 0.0 }
 0x27a   : > { %v919_v33 = vmul.f32 %v918_v13, %v913_v29  ;;  %v920_v34 = vmul.f32 %v918_v13, %v914_v30  ;;  %v940_v36 = vmul.f32 %v939_v15, %v934_v31  ;;  %v941_v37 = vmul.f32 %v939_v15, %v935_v35 }
 0x27b   : > { %v947_v38 = vsel %vm946_vm9, %v944_v28, %v945_v22  ;;  %v948_v39 = vsel %vm946_vm9, %v945_v22, %v944_v28  ;;  %v3004_v22 = vsub.s32 4, %v2930_v1  ;;  %v3011_v28 = vsub.s32 5, %v2930_v1 }
 0x27c   : > { %v921_v40 = vadd.f32 %v919_v33, %v900_v21  ;;  %v922_v41 = vadd.f32 %v920_v34, %v901_v32  ;;  %v955_v42 = vsel %vm949_vm10, %v948_v39, 0.0  ;;  %v956_v43 = vsel %vm950_vm11, %v947_v38, 0.0 }
 0x27d   : > { %v961_v46 = vmul.f32 %v960_v23, %v955_v42  ;;  %v962_v47 = vmul.f32 %v960_v23, %v956_v43  ;;  %v3016_v30 = vsub.s32 6, %v2930_v1  ;;  %v3023_v39 = vsub.s32 7, %v2930_v1 }
 0x27e   : > { %v942_v44 = vadd.f32 %v940_v36, %v921_v40  ;;  %v943_v45 = vadd.f32 %v941_v37, %v922_v41  ;;  %vm1943_vm3 = vcmask 1046528   ;;  %vm2735_vm4 = vmmov (!%p2428_p6), 0  }
 0x280   : > { %v964_v49 = vadd.f32 %v962_v47, %v943_v45  ;;  %v963_v50 = vadd.f32 %v961_v46, %v942_v44 }
 0x282   : > { %v972_v51 = vadd.f32 %v2401_v48, %v963_v50  ;;  %v973_v52 = vadd.f32 %v2401_v48, %v964_v49 }
 0x284   : > { %v974_v53 = vsub.f32 0.0, %v972_v51  ;;  %v975_v54 = vsub.f32 0.0, %v973_v52 }
 0x286   : > { %v976_v55 = vmul.f32 1.442695, %v974_v53  ;;  %v978_v56 = vmul.f32 1.442695, %v975_v54 }
 0x288   : > { %2603 = vpow2.f32 %v976_v55 }
 0x289   : > { %2605 = vpow2.f32 %v978_v56 }
 0x292   : > { %v2604_v57 = vpop.eup %2603 }
 0x293   : > { %v2606_v58 = vpop.eup %2605  ;;  %v980_v59 = vadd.f32 1.0, %v2604_v57 }
 0x294   : > { %v981_v60 = vadd.f32 1.0, %v2606_v58 }
 0x295   : > { %2607 = vrcp.f32 %v980_v59 }
 0x296   : > { %2609 = vrcp.f32 %v981_v60 }
 0x29f   : > { %v2608_v61 = vpop.eup %2607 }
 0x2a0   : > { %v2610_v62 = vpop.eup %2609  ;;  %v2981_v63 = vmul.f32 %v2608_v61, %v972_v51 }
 0x2a1   : > { %v2983_v0 = vmul.f32 %v2610_v62, %v973_v52 }
 0x2a3   : > { %v986_v2 = vpack.c.bf16 %v2983_v0, %v2981_v63 }
 0x2a5   : > { %1116 = vmatmul.mubr.bf16.vlgmr.msra.gmra.mrb[0].mxu1 %v986_v2 }
 0x378   : > { %v1117_v5 = vpop.f32.mrb[0].mxu1 }
 0x379   : > { %v1133_v6 = vadd.f32 %v2418_v4, %v1117_v5  ;;  %v1119_v9 = vpop.f32.mrb[1].mxu1 }
 0x37a   : > { %v1121_v10 = vpop.f32.mrb[2].mxu1  ;;  %v2993_v13 = vrot.slane %v1119_v9, %v2939_v7  ;;  %v1184_v14 = vrot.slane %v1119_v9, %v2948_v11  ;;  %v1472_v21 = vrot.slane %v1119_v9, %v2934_v3  ;;  %v3007_v26 = vrot.slane %v1119_v9, %v3004_v22 }
 0x37b   : > { %v1137_v15 = vand.u32 2147483647, %v1133_v6  ;;  %v2996_v16 = vadd.f32 %v2418_v4, %v1121_v10  ;;  %v2998_v17 = vpop.f32.mrb[3].mxu1  ;;  %v1280_v27 = vrot.slane %v1119_v9, %v2942_v8  ;;  %v1664_v29 = vrot.slane %v1119_v9, %v3011_v28 }
 0x37c   : > { %1382 = vbcast.lane.b32.xlu0 %v2993_v13, 264  ;;  %1186 = vbcast.lane.b32.xlu1 %v1184_v14, 256  ;;  %v1760_v31 = vrot.slane %v1119_v9, %v3016_v30  ;;  %v1135_v37 = vmax.f32 %v1133_v6, 0.0  ;;  %v1856_v43 = vrot.slane %v1119_v9, %v3023_v39  ;;  %v1195_v58 = vrot.slane %v2998_v17, %v2948_v11 }
 0x37d   : > { %v1139_v18 = vsub.f32 0.0, %v1137_v15  ;;  %v1138_v19 = vand.u32 2147483647, %v2996_v16  ;;  %v1136_v50 = vmax.f32 %v2996_v16, 0.0  ;;  %v1387_v62 = vrot.slane %v2998_v17, %v2939_v7  ;;  %v3132_v15 = vld [vmem:[%s2872_s5] sm:$0xff] }
 0x37e   : > { %v1483_v5 = vrot.slane %v2998_v17, %v2934_v3  ;;  %v3114_v6 = vrot.slane %v2998_v17, %v3004_v22  ;;  %v3119_v9 = vrot.slane %v2998_v17, %v3011_v28  ;;  %v1291_v10 = vrot.slane %v2998_v17, %v2942_v8 }
 0x37f   : > { %v1141_v23 = vmul.f32 1.442695, %v1139_v18  ;;  %v1140_v24 = vsub.f32 0.0, %v1138_v19  ;;  %v3137_v16 = vrot.slane %v2998_v17, %v3023_v39  ;;  %v3141_v19 = vld [vmem:[%s2872_s5 + $0x8] sm:$0xff] }
 0x380   : > { %1478 = vbcast.lane.b32.xlu0 %v1472_v21, 264  ;;  %1190 = vbcast.lane.b32.xlu1 %v1184_v14, 264 }
 0x381   : > { %2611 = vpow2.f32 %v1141_v23  ;;  %v1143_v25 = vmul.f32 1.442695, %v1140_v24 }
 0x383   : > { %2613 = vpow2.f32 %v1143_v25 }
 0x384   : > { %1574 = vbcast.lane.b32.xlu0 %v3007_v26, 264  ;;  %1282 = vbcast.lane.b32.xlu1 %v1280_v27, 256 }
 0x388   : > { %1670 = vbcast.lane.b32.xlu0 %v1664_v29, 264  ;;  %1286 = vbcast.lane.b32.xlu1 %v1280_v27, 264 }
 0x38b   : > { %v2612_v32 = vpop.eup %2611 }
 0x38c   : > { %v1145_v33 = vadd.f32 1.0, %v2612_v32  ;;  %1766 = vbcast.lane.b32.xlu0 %v1760_v31, 264  ;;  %1378 = vbcast.lane.b32.xlu1 %v2993_v13, 256 }
 0x38d   : > { %v2614_v34 = vpop.eup %2613 }
 0x38e   : > { %2615 = vlog2.f32 %v1145_v33  ;;  %v1146_v35 = vadd.f32 1.0, %v2614_v34 }
 0x390   : > { %1225 = vbcast.lane.b32.xlu0 %v1184_v14, 280  ;;  %1474 = vbcast.lane.b32.xlu1 %v1472_v21, 256  ;;  %2617 = vlog2.f32 %v1146_v35 }
 0x394   : > { %1321 = vbcast.lane.b32.xlu0 %v1280_v27, 280  ;;  %1570 = vbcast.lane.b32.xlu1 %v3007_v26, 256 }
 0x398   : > { %v2616_v36 = vpop.eup %2615  ;;  %1417 = vbcast.lane.b32.xlu0 %v2993_v13, 280  ;;  %1666 = vbcast.lane.b32.xlu1 %v1664_v29, 256 }
 0x399   : > { %v1148_v38 = vmul.f32 0.6931472, %v2616_v36 }
 0x39a   : > { %v2618_v42 = vpop.eup %2617 }
 0x39b   : > { %v3025_v40 = vadd.f32 %v1148_v38, %v1135_v37  ;;  %v1150_v48 = vmul.f32 0.6931472, %v2618_v42 }
 0x39c   : > { %1513 = vbcast.lane.b32.xlu0 %v1472_v21, 280  ;;  %1762 = vbcast.lane.b32.xlu1 %v1760_v31, 256 }
 0x39d   : > { %v3029_v41 = vmul.f32 %v3025_v40, %v2981_v63  ;;  %v3034_v44 = vrot.slane %v3025_v40, %v3004_v22  ;;  %v3038_v45 = vrot.slane %v3025_v40, %v3011_v28  ;;  %v3060_v51 = vrot.slane %v3025_v40, %v3016_v30 }
 0x39e   : > { %v3062_v52 = vadd.f32 %v1150_v48, %v1136_v50  ;;  %v3066_v53 = vrot.slane %v3025_v40, %v3023_v39 }
 0x39f   : > { %v3042_v1 = vrot.slane %v3029_v41, %v3004_v22  ;;  %v3046_v46 = vrot.slane %v3029_v41, %v3011_v28  ;;  %v3050_v47 = vrot.slane %v3029_v41, %v3016_v30  ;;  %v3054_v49 = vrot.slane %v3029_v41, %v3023_v39 }
 0x3a0   : > { %1862 = vbcast.lane.b32.xlu0 %v1856_v43, 264  ;;  %1221 = vbcast.lane.b32.xlu1 %v1184_v14, 272  ;;  %v3071_v54 = vmul.f32 %v3062_v52, %v2983_v0  ;;  %v3093_v60 = vrot.slane %v3062_v52, %v3004_v22  ;;  %v3098_v61 = vrot.slane %v3062_v52, %v3011_v28 }
 0x3a1   : > { %v3104_v2 = vrot.slane %v3062_v52, %v3016_v30  ;;  %v3108_v4 = vrot.slane %v3062_v52, %v3023_v39  ;;  %v1160_v14 = vrot.slane %v3025_v40, %v2948_v11  ;;  %v3163_v34 = vrot.slane %v3029_v41, %v2939_v7 }
 0x3a2   : > { %v3075_v55 = vrot.slane %v3071_v54, %v3004_v22  ;;  %v3079_v56 = vrot.slane %v3071_v54, %v3011_v28  ;;  %v3083_v57 = vrot.slane %v3071_v54, %v3016_v30  ;;  %v3089_v59 = vrot.slane %v3071_v54, %v3023_v39 }
 0x3a3   : > { %v1165_v18 = vmul.f32 %v1160_v14, %v3132_v15  ;;  %v1166_v22 = vmul.f32 %v1160_v14, %v3141_v19  ;;  %v1206_v35 = vrot.slane %v3029_v41, %v2948_v11 }
 0x3a4   : > { %1609 = vbcast.lane.b32.xlu0 %v3007_v26, 280  ;;  %1317 = vbcast.lane.b32.xlu1 %v1280_v27, 272 }
 0x3a5   : > { %v1169_v23 = vmul.f32 1.442695, %v1165_v18  ;;  %v1171_v24 = vmul.f32 1.442695, %v1166_v22  ;;  %v1550_v22 = vmul.f32 %v3034_v44, %v3141_v19 }
 0x3a7   : > { %2619 = vpow2.f32 %v1169_v23 }
 0x3a8   : > { %1705 = vbcast.lane.b32.xlu0 %v1664_v29, 280  ;;  %1413 = vbcast.lane.b32.xlu1 %v2993_v13, 272  ;;  %v3126_v13 = vrot.slane %v2998_v17, %v3016_v30  ;;  %2621 = vpow2.f32 %v1171_v24  ;;  %v1448_v30 = vrot.slane %v3025_v40, %v2934_v3 }
 0x3aa   : > { %v1454_v38 = vmul.f32 %v1448_v30, %v3141_v19  ;;  %v1453_v50 = vmul.f32 %v1448_v30, %v3132_v15 }
 0x3ac   : > { %1801 = vbcast.lane.b32.xlu0 %v1760_v31, 280  ;;  %1509 = vbcast.lane.b32.xlu1 %v1472_v21, 272  ;;  %v1256_v21 = vrot.slane %v3025_v40, %v2942_v8 }
 0x3ae   : > { %v1261_v17 = vmul.f32 %v1256_v21, %v3132_v15  ;;  %v1262_v25 = vmul.f32 %v1256_v21, %v3141_v19  ;;  %v1459_v21 = vmul.f32 1.442695, %v1454_v38 }
 0x3b0   : > { %1897 = vbcast.lane.b32.xlu0 %v1856_v43, 280  ;;  %1858 = vbcast.lane.b32.xlu1 %v1856_v43, 256  ;;  %v1265_v27 = vmul.f32 1.442695, %v1261_v17  ;;  %v1267_v28 = vmul.f32 1.442695, %v1262_v25 }
 0x3b1   : > { %v1457_v25 = vmul.f32 1.442695, %v1453_v50  ;;  %v1742_v50 = vmul.f32 %v3060_v51, %v3141_v19 }
 0x3b2   : > { %2623 = vpow2.f32 %v1265_v27  ;;  %v1302_v27 = vrot.slane %v3029_v41, %v2942_v8 }
 0x3b3   : > { %2625 = vpow2.f32 %v1267_v28 }
 0x3b4   : > { %1605 = vbcast.lane.b32.xlu1 %v3007_v26, 272  ;;  %1197 = vbcast.lane.b32.xlu0 %v1195_v58, 256  ;;  %v1352_v26 = vrot.slane %v3025_v40, %v2939_v7 }
 0x3b6   : > { %v1358_v32 = vmul.f32 %v1352_v26, %v3141_v19 }
 0x3b8   : > { %1701 = vbcast.lane.b32.xlu1 %v1664_v29, 272  ;;  %1393 = vbcast.lane.b32.xlu0 %v1387_v62, 264  ;;  %v1357_v29 = vmul.f32 %v1352_v26, %v3132_v15  ;;  %v1363_v48 = vmul.f32 1.442695, %v1358_v32  ;;  %v1549_v26 = vmul.f32 %v3034_v44, %v3132_v15  ;;  %v1555_v32 = vmul.f32 1.442695, %v1550_v22 }
 0x3ba   : > { %v1361_v33 = vmul.f32 1.442695, %v1357_v29  ;;  %v1553_v44 = vmul.f32 1.442695, %v1549_v26  ;;  %v1838_v26 = vmul.f32 %v3066_v53, %v3141_v19 }
 0x3bc   : > { %1797 = vbcast.lane.b32.xlu1 %v1760_v31, 272  ;;  %1489 = vbcast.lane.b32.xlu0 %v1483_v5, 264  ;;  %v2620_v31 = vpop.eup %2619  ;;  %2627 = vpow2.f32 %v1361_v33  ;;  %v1646_v33 = vmul.f32 %v3038_v45, %v3141_v19 }
 0x3bd   : > { %v1177_v42 = vmul.f32 0.0, %v2620_v31  ;;  %2629 = vpow2.f32 %v1363_v48 }
 0x3be   : > { %2631 = vpow2.f32 %v1459_v21  ;;  %v1651_v48 = vmul.f32 1.442695, %v1646_v33  ;;  %v2732_v21 = vmov 0.0  }
 0x3bf   : > { %2633 = vpow2.f32 %v1457_v25  ;;  %2472 = vmatprep.subr.bf16.mxu0 %v2732_v21  ;;  %v1747_v25 = vmul.f32 1.442695, %v1742_v50  ;;  %2488 = vmatprep.mubr.msk.bf16.mxu0 %vm2733_vm12, %v2732_v21 }
 0x3c0   : > { %1893 = vbcast.lane.b32.xlu1 %v1856_v43, 272  ;;  %1585 = vbcast.lane.b32.xlu0 %v3114_v6, 264  ;;  %v2622_v43 = vpop.eup %2621  ;;  %2635 = vpow2.f32 %v1555_v32 }
 0x3c1   : > { %v1178_v17 = vmul.f32 0.0, %v2622_v43  ;;  %2637 = vpow2.f32 %v1553_v44 }
 0x3c2   : > { %2639 = vpow2.f32 %v1651_v48 }
 0x3c4   : > { %1201 = vbcast.lane.b32.xlu1 %v1195_v58, 264  ;;  %1681 = vbcast.lane.b32.xlu0 %v3119_v9, 264 }
 0x3c8   : > { %1293 = vbcast.lane.b32.xlu1 %v1291_v10, 256  ;;  %1777 = vbcast.lane.b32.xlu0 %v3126_v13, 264 }
 0x3cc   : > { %1297 = vbcast.lane.b32.xlu1 %v1291_v10, 264  ;;  %1233 = vbcast.lane.b32.xlu0 %v1195_v58, 280 }
 0x3d0   : > { %1389 = vbcast.lane.b32.xlu1 %v1387_v62, 256  ;;  %1329 = vbcast.lane.b32.xlu0 %v1291_v10, 280 }
 0x3d4   : > { %1485 = vbcast.lane.b32.xlu1 %v1483_v5, 256  ;;  %1425 = vbcast.lane.b32.xlu0 %v1387_v62, 280 }
 0x3d8   : > { %1581 = vbcast.lane.b32.xlu1 %v3114_v6, 256  ;;  %1521 = vbcast.lane.b32.xlu0 %v1483_v5, 280 }
 0x3dc   : > { %1677 = vbcast.lane.b32.xlu1 %v3119_v9, 256  ;;  %1873 = vbcast.lane.b32.xlu0 %v3137_v16, 264 }
 0x3e0   : > { %1773 = vbcast.lane.b32.xlu1 %v3126_v13, 256  ;;  %1617 = vbcast.lane.b32.xlu0 %v3114_v6, 280 }
 0x3e4   : > { %1229 = vbcast.lane.b32.xlu1 %v1195_v58, 272  ;;  %1713 = vbcast.lane.b32.xlu0 %v3119_v9, 280  ;;  %v3174_v58 = vrot.slane %v3029_v41, %v2934_v3  ;;  %v1645_v41 = vmul.f32 %v3038_v45, %v3132_v15 }
 0x3e6   : > { %v1649_v45 = vmul.f32 1.442695, %v1645_v41  ;;  %v1843_v41 = vmul.f32 1.442695, %v1838_v26  ;;  %v2594_v26 = vld [vmem:[%s2878_s30 + $0x18] sm:$0xff]  }
 0x3e8   : > { %1325 = vbcast.lane.b32.xlu1 %v1291_v10, 272  ;;  %1809 = vbcast.lane.b32.xlu0 %v3126_v13, 280  ;;  %v2624_v10 = vpop.eup %2623  ;;  %2641 = vpow2.f32 %v1649_v45 }
 0x3e9   : > { %v2626_v29 = vpop.eup %2625  ;;  %2643 = vpow2.f32 %v1747_v25 }
 0x3ec   : > { %1421 = vbcast.lane.b32.xlu1 %v1387_v62, 272  ;;  %1905 = vbcast.lane.b32.xlu0 %v3137_v16, 280 }
 0x3ee   : > { %v1383_v36 = vpop.permute.xlu0 %1382  ;;  %v1187_v37 = vpop.permute.xlu1 %1186 }
 0x3ef   : > { %v3169_v39 = vmul.f32 %v3163_v34, %v1383_v36  ;;  %v1211_v40 = vmul.f32 %v1206_v35, %v1187_v37 }
 0x3f0   : > { %1517 = vbcast.lane.b32.xlu1 %v1483_v5, 272 }
 0x3f1   : > { %v3176_v62 = vadd.f32 %v1211_v40, %v1177_v42  ;;  %v2628_v40 = vpop.eup %2627 }
 0x3f2   : > { %v1479_v14 = vpop.permute.xlu0 %1478  ;;  %v1191_v18 = vpop.permute.xlu1 %1190 }
 0x3f3   : > { %v3181_v23 = vmul.f32 %v3174_v58, %v1479_v14  ;;  %v1212_v5 = vmul.f32 %v1206_v35, %v1191_v18  ;;  %v1273_v24 = vmul.f32 %v2624_v10, %v3176_v62  ;;  %v1741_v18 = vmul.f32 %v3060_v51, %v3132_v15 }
 0x3f4   : > { %1869 = vbcast.lane.b32.xlu1 %v3137_v16, 256 }
 0x3f5   : > { %v1216_v28 = vadd.f32 %v1212_v5, %v1178_v17  ;;  %v2630_v5 = vpop.eup %2629  ;;  %v1745_v51 = vmul.f32 1.442695, %v1741_v18 }
 0x3f6   : > { %v1575_v30 = vpop.permute.xlu0 %1574  ;;  %v1283_v31 = vpop.permute.xlu1 %1282 }
 0x3f7   : > { %v3192_v35 = vmul.f32 %v3042_v1, %v1575_v30  ;;  %v1307_v36 = vmul.f32 %v1302_v27, %v1283_v31  ;;  %v1274_v37 = vmul.f32 %v2626_v29, %v1216_v28  ;;  %v2591_v30 = vld [vmem:[%s2878_s30] sm:$0xff]   ;;  %v1837_v31 = vmul.f32 %v3066_v53, %v3132_v15  ;;  %v2632_v32 = vpop.eup %2631 }
 0x3f8   : > { %1613 = vbcast.lane.b32.xlu1 %v3114_v6, 272  ;;  %2473 = vmatpush3.bf16.msra.mxu0 %v2591_v30  ;;  %2645 = vpow2.f32 %v1745_v51 }
 0x3f9   : > { %v3197_v38 = vadd.f32 %v1307_v36, %v1273_v24  ;;  %2474 = vmatprep.subr.bf16.mxu0 %v2732_v21  ;;  %v1841_v48 = vmul.f32 1.442695, %v1837_v31  ;;  %2647 = vpow2.f32 %v1843_v41 }
 0x3fa   : > { %v1671_v42 = vpop.permute.xlu0 %1670  ;;  %v1287_v43 = vpop.permute.xlu1 %1286 }
 0x3fb   : > { %v3202_v10 = vmul.f32 %v3046_v46, %v1671_v42  ;;  %v1308_v14 = vmul.f32 %v1302_v27, %v1287_v43  ;;  %v1369_v6 = vmul.f32 %v2628_v40, %v3197_v38  ;;  %v2592_v43 = vld [vmem:[%s2878_s30 + $0x8] sm:$0xff]   ;;  %2649 = vpow2.f32 %v1841_v48 }
 0x3fc   : > { %1709 = vbcast.lane.b32.xlu1 %v3119_v9, 272  ;;  %2475 = vmatpush3.bf16.msra.mxu0 %v2592_v43  ;;  %v2596_v48 = vld [vmem:[%s2878_s30 + $0x28] sm:$0xff]  }
 0x3fd   : > { %v1312_v22 = vadd.f32 %v1308_v14, %v1274_v37  ;;  %v2634_v37 = vpop.eup %2633  ;;  %2476 = vmatprep.subr.bf16.mxu0 %v2732_v21 }
 0x3fe   : > { %v1767_v17 = vpop.permute.xlu0 %1766  ;;  %v1379_v24 = vpop.permute.xlu1 %1378 }
 0x3ff   : > { %v3212_v27 = vmul.f32 %v3050_v47, %v1767_v17  ;;  %v1403_v9 = vmul.f32 %v3163_v34, %v1379_v24  ;;  %v1370_v29 = vmul.f32 %v2630_v5, %v1312_v22 }
 0x400   : > { %1805 = vbcast.lane.b32.xlu1 %v3126_v13, 272 }
 0x401   : > { %v1408_v33 = vadd.f32 %v3169_v39, %v1370_v29  ;;  %v3220_v36 = vadd.f32 %v1403_v9, %v1369_v6  ;;  %v2636_v39 = vpop.eup %2635  ;;  %v2593_v6 = vld [vmem:[%s2878_s30 + $0x10] sm:$0xff]  }
 0x402   : > { %v1226_v44 = vpop.permute.xlu0 %1225  ;;  %v1475_v34 = vpop.permute.xlu1 %1474  ;;  %2477 = vmatpush3.bf16.msra.mxu0 %v2593_v6 }
 0x403   : > { %v3223_v13 = vmul.f32 %v1226_v44, %v1216_v28  ;;  %v1499_v40 = vmul.f32 %v3174_v58, %v1475_v34  ;;  %v1466_v42 = vmul.f32 %v2632_v32, %v1408_v33  ;;  %v1465_v53 = vmul.f32 %v2634_v37, %v3220_v36  ;;  %v2638_v45 = vpop.eup %2637  ;;  %2478 = vmatprep.subr.bf16.mxu0 %v2732_v21  ;;  %v2595_v44 = vld [vmem:[%s2878_s30 + $0x20] sm:$0xff]  }
 0x404   : > { %1901 = vbcast.lane.b32.xlu1 %v3137_v16, 272  ;;  %v2640_v17 = vpop.eup %2639 }
 0x405   : > { %v1504_v50 = vadd.f32 %v3181_v23, %v1466_v42  ;;  %v3230_v14 = vadd.f32 %v1499_v40, %v1465_v53  ;;  %v2642_v9 = vpop.eup %2641 }
 0x406   : > { %v1322_v28 = vpop.permute.xlu0 %1321  ;;  %v1571_v18 = vpop.permute.xlu1 %1570  ;;  %2479 = vmatpush3.bf16.msra.mxu0 %v2594_v26 }
 0x407   : > { %v1332_v58 = vmul.f32 %v1322_v28, %v1312_v22  ;;  %v1595_v16 = vmul.f32 %v3042_v1, %v1571_v18  ;;  %v1562_v5 = vmul.f32 %v2636_v39, %v1504_v50  ;;  %v1561_v23 = vmul.f32 %v2638_v45, %v3230_v14  ;;  %v2644_v32 = vpop.eup %2643  ;;  %2480 = vmatprep.subr.bf16.mxu0 %v2732_v21 }
 0x408   : > { %v2646_v34 = vpop.eup %2645  ;;  %v1961_v45 = vsub.f32 0.0, %v2950_v12 }
 0x409   : > { %v1600_v24 = vadd.f32 %v3192_v35, %v1562_v5  ;;  %v3238_v25 = vadd.f32 %v1595_v16, %v1561_v23  ;;  %v2648_v43 = vpop.eup %2647 }
 0x40a   : > { %v1418_v29 = vpop.permute.xlu0 %1417  ;;  %v1667_v30 = vpop.permute.xlu1 %1666  ;;  %2481 = vmatpush3.bf16.msra.mxu0 %v2595_v44  ;;  %v1963_v26 = vmul.f32 1.442695, %v1961_v45 }
 0x40b   : > { %v1428_v22 = vmul.f32 %v1418_v29, %v1408_v33  ;;  %v1691_v1 = vmul.f32 %v3046_v46, %v1667_v30  ;;  %v1658_v51 = vmul.f32 %v2640_v17, %v1600_v24  ;;  %v1657_v31 = vmul.f32 %v2642_v9, %v3238_v25  ;;  %v2650_v6 = vpop.eup %2649  ;;  %2482 = vmatprep.subr.bf16.mxu0 %v2732_v21  ;;  %v2597_v17 = vld [vmem:[%s2878_s30 + $0x30] sm:$0xff]  }
 0x40c   : > { %2651 = vpow2.f32 %v1963_v26 }
 0x40d   : > { %v1696_v37 = vadd.f32 %v3202_v10, %v1658_v51  ;;  %v3245_v35 = vadd.f32 %v1691_v1, %v1657_v31 }
 0x40e   : > { %v1514_v41 = vpop.permute.xlu0 %1513  ;;  %v1763_v40 = vpop.permute.xlu1 %1762  ;;  %2483 = vmatpush3.bf16.msra.mxu0 %v2596_v48 }
 0x40f   : > { %v1524_v42 = vmul.f32 %v1514_v41, %v1504_v50  ;;  %v1787_v33 = vmul.f32 %v3050_v47, %v1763_v40  ;;  %v1754_v46 = vmul.f32 %v2644_v32, %v1696_v37  ;;  %v1753_v53 = vmul.f32 %v2646_v34, %v3245_v35  ;;  %2484 = vmatprep.subr.bf16.mxu0 %v2732_v21  ;;  %v2598_v32 = vld [vmem:[%s2878_s30 + $0x38] sm:$0xff]   ;;  %s3507_s30 = sld [smem:[#allocation9_spill]] (!%p2428_p6) }
 0x411   : > { %v3252_v39 = vadd.f32 %v3212_v27, %v1754_v46  ;;  %v3254_v10 = vadd.f32 %v1787_v33, %v1753_v53  ;;  %v1164_v46 = vrot.slane %v3062_v52, %v2948_v11 }
 0x412   : > { %v1863_v28 = vpop.permute.xlu0 %1862  ;;  %v1222_v18 = vpop.permute.xlu1 %1221  ;;  %2485 = vmatpush3.bf16.msra.mxu0 %v2597_v17 }
 0x413   : > { %v1884_v47 = vmul.f32 %v3054_v49, %v1863_v28  ;;  %v1235_v50 = vmul.f32 %v1222_v18, %v3176_v62  ;;  %v1850_v16 = vmul.f32 %v2648_v43, %v3252_v39  ;;  %v1849_v27 = vmul.f32 %v2650_v6, %v3254_v10  ;;  %2486 = vmatprep.subr.bf16.mxu0 %v2732_v21 }
 0x414   : > { %v1167_v21 = vmul.f32 %v1164_v46, %v3132_v15  ;;  %v1168_v17 = vmul.f32 %v1164_v46, %v3141_v19 }
 0x415   : > { %v1239_v5 = vadd.f32 %v3223_v13, %v1235_v50  ;;  %v3264_v23 = vadd.f32 %v1884_v47, %v1850_v16  ;;  %s3508_s14 = smov (!%p2428_p6), %s3507_s30 }
 0x416   : > { %v1610_v9 = vpop.permute.xlu0 %1609  ;;  %v1318_v29 = vpop.permute.xlu1 %1317  ;;  %2487 = vmatpush3.bf16.msra.mxu0 %v2598_v32 }
 0x417   : > { %v1240_v30 = vrot.slane %v1239_v5, 4  ;;  %v1620_v1 = vmul.f32 %v1610_v9, %v1600_v24  ;;  %v1331_v62 = vmul.f32 %v1318_v29, %v3197_v38  ;;  %v2652_v26 = vpop.eup %2651  ;;  %v1173_v29 = vmul.f32 1.442695, %v1167_v21 }
 0x419   : > { %v1241_v51 = vadd.f32 %v1240_v30, %v1239_v5  ;;  %v1335_v31 = vadd.f32 %v1332_v58, %v1331_v62  ;;  %2653 = vpow2.f32 %v1173_v29 }
 0x41a   : > { %v1706_v44 = vpop.permute.xlu0 %1705  ;;  %v1414_v13 = vpop.permute.xlu1 %1413 }
 0x41b   : > { %v1242_v34 = vrot.slane %v1241_v51, 2  ;;  %v1336_v41 = vrot.slane %v1335_v31, 4  ;;  %v1716_v40 = vmul.f32 %v1706_v44, %v1696_v37  ;;  %v1427_v33 = vmul.f32 %v1414_v13, %v3220_v36 }
 0x41d   : > { %v1243_v24 = vadd.f32 %v1242_v34, %v1241_v51  ;;  %v1337_v53 = vadd.f32 %v1336_v41, %v1335_v31  ;;  %v1431_v38 = vadd.f32 %v1428_v22, %v1427_v33  ;;  %v1175_v41 = vmul.f32 1.442695, %v1168_v17 }
 0x41e   : > { %v1802_v58 = vpop.permute.xlu0 %1801  ;;  %v1510_v43 = vpop.permute.xlu1 %1509  ;;  %v1967_v33 = vadd.f32 1.0, %v2652_v26 }
 0x41f   : > { %v1338_v48 = vrot.slane %v1337_v53, 2  ;;  %v1432_v6 = vrot.slane %v1431_v38, 4  ;;  %v1523_v45 = vmul.f32 %v1510_v43, %v3230_v14  ;;  %v1244_v28 = vrot.slane %v1243_v24, 1 }
 0x420   : > { %v1260_v14 = vrot.slane %v3062_v52, %v2942_v8  ;;  %2655 = vpow2.f32 %v1175_v41 }
 0x421   : > { %v1339_v18 = vadd.f32 %v1338_v48, %v1337_v53  ;;  %v1433_v37 = vadd.f32 %v1432_v6, %v1431_v38  ;;  %v1527_v47 = vadd.f32 %v1524_v42, %v1523_v45  ;;  %v1245_v30 = vadd.f32 %v1244_v28, %v1243_v24 }
 0x422   : > { %v3276_v36 = vpop.permute.xlu0 %1897  ;;  %v1859_v50 = vpop.permute.xlu1 %1858  ;;  %v1264_v43 = vmul.f32 %v1260_v14, %v3141_v19  ;;  %v1356_v6 = vrot.slane %v3062_v52, %v2939_v7  ;;  %v1452_v45 = vrot.slane %v3062_v52, %v2934_v3  ;;  %2657 = vrcp.f32 %v1967_v33 }
 0x423   : > { %v1340_v16 = vrot.slane %v1339_v18, 1  ;;  %v1434_v5 = vrot.slane %v1433_v37, 2  ;;  %v1883_v22 = vmul.f32 %v3054_v49, %v1859_v50  ;;  %v1528_v9 = vrot.slane %v1527_v47, 4 }
 0x424   : > { %v1360_v17 = vmul.f32 %v1356_v6, %v3141_v19  ;;  %v1456_v26 = vmul.f32 %v1452_v45, %v3141_v19 }
 0x425   : > { %v1341_v62 = vadd.f32 %v1340_v16, %v1339_v18  ;;  %v1435_v51 = vadd.f32 %v1434_v5, %v1433_v37  ;;  %v1887_v42 = vadd.f32 %v1883_v22, %v1849_v27  ;;  %v1529_v31 = vadd.f32 %v1528_v9, %v1527_v47 }
 0x426   : > { %v1606_v32 = vpop.permute.xlu1 %1605  ;;  %v1198_v44 = vpop.permute.xlu0 %1197  ;;  %v1210_v37 = vrot.slane %v3071_v54, %v2948_v11  ;;  %v1271_v16 = vmul.f32 1.442695, %v1264_v43 }
 0x427   : > { %v1926_v13 = vsel %vm1925_vm13, %v1245_v30, %v1341_v62  ;;  %v1436_v34 = vrot.slane %v1435_v51, 1  ;;  %v1619_v49 = vmul.f32 %v1606_v32, %v3238_v25  ;;  %v1530_v46 = vrot.slane %v1529_v31, 2 }
 0x428   : > { %v1263_v25 = vmul.f32 %v1260_v14, %v3132_v15  ;;  %v1359_v62 = vmul.f32 %v1356_v6, %v3132_v15  ;;  %2659 = vpow2.f32 %v1271_v16 }
 0x429   : > { %v1437_v53 = vadd.f32 %v1436_v34, %v1435_v51  ;;  %v1623_v38 = vadd.f32 %v1620_v1, %v1619_v49  ;;  %v1531_v24 = vadd.f32 %v1530_v46, %v1529_v31  ;;  %v1463_v34 = vmul.f32 1.442695, %v1456_v26  ;;  %v2654_v49 = vpop.eup %2653 }
 0x42a   : > { %v1702_v48 = vpop.permute.xlu1 %1701  ;;  %v3285_v27 = vpop.permute.xlu0 %1393  ;;  %v1269_v9 = vmul.f32 1.442695, %v1263_v25  ;;  %v1365_v43 = vmul.f32 1.442695, %v1359_v62 }
 0x42b   : > { %v1929_v21 = vsel %vm1928_vm14, %v1926_v13, %v1437_v53  ;;  %v1624_v28 = vrot.slane %v1623_v38, 4  ;;  %v1715_v1 = vmul.f32 %v1702_v48, %v3245_v35  ;;  %v1532_v18 = vrot.slane %v1531_v24, 1  ;;  %v2656_v48 = vpop.eup %2655 }
 0x42c   : > { %v1812_v35 = vmul.f32 %v1802_v58, %v3252_v39  ;;  %v1908_v39 = vmul.f32 %v3276_v36, %v3264_v23  ;;  %2661 = vpow2.f32 %v1269_v9  ;;  %v1213_v53 = vmul.f32 %v1210_v37, %v1198_v44 }
 0x42d   : > { %v1625_v47 = vadd.f32 %v1624_v28, %v1623_v38  ;;  %v1719_v50 = vadd.f32 %v1716_v40, %v1715_v1  ;;  %v1533_v5 = vadd.f32 %v1532_v18, %v1531_v24  ;;  %v3305_v40 = vrot.slane %v3071_v54, %v2942_v8 }
 0x42e   : > { %v1798_v22 = vpop.permute.xlu1 %1797  ;;  %v3296_v52 = vpop.permute.xlu0 %1489  ;;  %v1552_v38 = vmul.f32 %v3093_v60, %v3141_v19  ;;  %v1455_v24 = vmul.f32 %v1452_v45, %v3132_v15  ;;  %v1179_v18 = vmul.f32 0.0, %v2654_v49 }
 0x42f   : > { %v1626_v14 = vrot.slane %v1625_v47, 2  ;;  %v1720_v29 = vrot.slane %v1719_v50, 4  ;;  %v1811_v30 = vmul.f32 %v1798_v22, %v3254_v10  ;;  %v1932_v11 = vsel %vm1931_vm15, %v1929_v21, %v1533_v5  ;;  %v2658_v21 = vpop.eup %2657 }
 0x430   : > { %v1367_v10 = vmul.f32 1.442695, %v1360_v17  ;;  %v1180_v5 = vmul.f32 0.0, %v2656_v48  ;;  %v1461_v22 = vmul.f32 1.442695, %v1455_v24 }
 0x431   : > { %v1627_v51 = vadd.f32 %v1626_v14, %v1625_v47  ;;  %v1721_v31 = vadd.f32 %v1720_v29, %v1719_v50  ;;  %v1815_v32 = vadd.f32 %v1812_v35, %v1811_v30  ;;  %v3320_v35 = vadd.f32 %v1213_v53, %v1179_v18 }
 0x432   : > { %v1894_v58 = vpop.permute.xlu1 %1893  ;;  %v3310_v13 = vpop.permute.xlu0 %1585  ;;  %2663 = vpow2.f32 %v1367_v10  ;;  %v1647_v10 = vmul.f32 %v3098_v61, %v3132_v15 }
 0x433   : > { %v1628_v41 = vrot.slane %v1627_v51, 1  ;;  %v1722_v33 = vrot.slane %v1721_v31, 2  ;;  %v1816_v8 = vrot.slane %v1815_v32, 4  ;;  %v1907_v46 = vmul.f32 %v1894_v58, %v1887_v42 }
 0x434   : > { %v1551_v42 = vmul.f32 %v3093_v60, %v3132_v15  ;;  %2665 = vpow2.f32 %v1365_v43  ;;  %v1559_v60 = vmul.f32 1.442695, %v1552_v38 }
 0x435   : > { %v1629_v23 = vadd.f32 %v1628_v41, %v1627_v51  ;;  %v1723_v36 = vadd.f32 %v1722_v33, %v1721_v31  ;;  %v1817_v6 = vadd.f32 %v1816_v8, %v1815_v32  ;;  %v1911_v25 = vadd.f32 %v1908_v39, %v1907_v46  ;;  %v3340_v8 = vld [vmem:[%s624_s26] ss:$0 sm:$0xff] }
 0x436   : > { %v1202_v28 = vpop.permute.xlu1 %1201  ;;  %v3315_v1 = vpop.permute.xlu0 %1681  ;;  %2667 = vpow2.f32 %v1463_v34  ;;  %v1557_v58 = vmul.f32 1.442695, %v1551_v42  ;;  %v1402_v34 = vrot.slane %v3071_v54, %v2939_v7  ;;  %v1744_v7 = vmul.f32 %v3104_v2, %v3141_v19 }
 0x437   : > { %v1935_v44 = vsel %vm1934_vm0, %v1932_v11, %v1629_v23  ;;  %v1724_v47 = vrot.slane %v1723_v36, 1  ;;  %v1818_v50 = vrot.slane %v1817_v6, 2  ;;  %v1912_v45 = vrot.slane %v1911_v25, 4 }
 0x438   : > { %v1214_v16 = vmul.f32 %v1210_v37, %v1202_v28  ;;  %v1648_v11 = vmul.f32 %v3098_v61, %v3141_v19  ;;  %v2660_v37 = vpop.eup %2659  ;;  %2669 = vpow2.f32 %v1461_v22  ;;  %v1970_v28 = vmul.f32 %v2658_v21, %v2950_v12 }
 0x439   : > { %v1725_v17 = vadd.f32 %v1724_v47, %v1723_v36  ;;  %v1819_v26 = vadd.f32 %v1818_v50, %v1817_v6  ;;  %v1913_v9 = vadd.f32 %v1912_v45, %v1911_v25  ;;  %v2662_v39 = vpop.eup %2661  ;;  %2671 = vpow2.f32 %v1559_v60 }
 0x43a   : > { %v1294_v14 = vpop.permute.xlu1 %1293  ;;  %v3322_v29 = vpop.permute.xlu0 %1777  ;;  %v3324_v30 = vadd.f32 %v1214_v16, %v1180_v5  ;;  %v1275_v33 = vmul.f32 %v2662_v39, %v3320_v35  ;;  %v1655_v61 = vmul.f32 1.442695, %v1648_v11  ;;  %2673 = vpow2.f32 %v1557_v58 }
 0x43b   : > { %v1938_v62 = vsel %vm1937_vm1, %v1935_v44, %v1725_v17  ;;  %v1820_v51 = vrot.slane %v1819_v26, 1  ;;  %v1914_v31 = vrot.slane %v1913_v9, 2  ;;  %v1309_v32 = vmul.f32 %v3305_v40, %v1294_v14 }
 0x43c   : > { %v1276_v38 = vmul.f32 %v2660_v37, %v3324_v30  ;;  %v2664_v36 = vpop.eup %2663  ;;  %v1653_v6 = vmul.f32 1.442695, %v1647_v10  ;;  %v1743_v25 = vmul.f32 %v3104_v2, %v3132_v15  ;;  %v1957_v18 = vmul.f32 %v3340_v8, %v2981_v63 }
 0x43d   : > { %v1821_v49 = vadd.f32 %v1820_v51, %v1819_v26  ;;  %v1915_v41 = vadd.f32 %v1914_v31, %v1913_v9  ;;  %v3349_v23 = vadd.f32 %v1309_v32, %v1275_v33  ;;  %2675 = vpow2.f32 %v1655_v61 }
 0x43e   : > { %v1298_v46 = vpop.permute.xlu1 %1297  ;;  %v3342_v53 = vpop.permute.xlu0 %1233  ;;  %v1751_v16 = vmul.f32 1.442695, %v1744_v7  ;;  %v1840_v2 = vmul.f32 %v3108_v4, %v3141_v19  ;;  %2677 = vpow2.f32 %v1653_v6  ;;  %v1749_v17 = vmul.f32 1.442695, %v1743_v25 }
 0x43f   : > { %v1941_v43 = vsel %vm1940_vm2, %v1938_v62, %v1821_v49  ;;  %v1916_v24 = vrot.slane %v1915_v41, 1  ;;  %v1310_v48 = vmul.f32 %v3305_v40, %v1298_v46  ;;  %v2666_v47 = vpop.eup %2665  ;;  %v1406_v40 = vmul.f32 %v1402_v34, %v3285_v27 }
 0x440   : > { %v1371_v21 = vmul.f32 %v2666_v47, %v3349_v23  ;;  %v2668_v22 = vpop.eup %2667  ;;  %v1839_v27 = vmul.f32 %v3108_v4, %v3132_v15  ;;  %v1498_v9 = vrot.slane %v3071_v54, %v2934_v3  ;;  %2679 = vpow2.f32 %v1751_v16 }
 0x441   : > { %v1917_v42 = vadd.f32 %v1916_v24, %v1915_v41  ;;  %v3356_v44 = vadd.f32 %v1310_v48, %v1276_v38  ;;  %v1847_v37 = vmul.f32 1.442695, %v1840_v2  ;;  %2681 = vpow2.f32 %v1749_v17 }
 0x442   : > { %v1390_v50 = vpop.permute.xlu1 %1389  ;;  %v3359_v45 = vpop.permute.xlu0 %1329  ;;  %v1502_v51 = vmul.f32 %v1498_v9, %v3296_v52  ;;  %v1845_v58 = vmul.f32 1.442695, %v1839_v27  ;;  %v1598_v49 = vmul.f32 %v3075_v55, %v3310_v13  ;;  %v1694_v48 = vmul.f32 %v3079_v56, %v3315_v1 }
 0x443   : > { %v1405_v5 = vmul.f32 %v1402_v34, %v1390_v50  ;;  %v1372_v12 = vmul.f32 %v2664_v36, %v3356_v44  ;;  %v1944_v63 = vsel %vm1943_vm3, %v1941_v43, %v1917_v42  ;;  %v2670_v19 = vpop.eup %2669  ;;  %2683 = vpow2.f32 %v1847_v37 }
 0x444   : > { %v1959_v26 = vadd.f32 %v1957_v18, %v1944_v63  ;;  %v2672_v4 = vpop.eup %2671  ;;  %2685 = vpow2.f32 %v1845_v58  ;;  %v1790_v47 = vmul.f32 %v3083_v57, %v3322_v29  ;;  %v1238_v27 = vmul.f32 %v3342_v53, %v3324_v30 }
 0x445   : > { %v1410_v14 = vadd.f32 %v1406_v40, %v1372_v12  ;;  %v3370_v60 = vadd.f32 %v1405_v5, %v1371_v21  ;;  %v2674_v10 = vpop.eup %2673 }
 0x446   : > { %v1486_v11 = vpop.permute.xlu1 %1485  ;;  %v3372_v62 = vmul.f32 %v1970_v28, %v1959_v26  ;;  %v1426_v15 = vpop.permute.xlu0 %1425 }
 0x447   : > { %v1501_v31 = vmul.f32 %v1498_v9, %v1486_v11  ;;  %v1468_v32 = vmul.f32 %v2668_v22, %v1410_v14  ;;  %v1467_v39 = vmul.f32 %v2670_v19, %v3370_v60  ;;  %v2676_v46 = vpop.eup %2675  ;;  %v1334_v9 = vmul.f32 %v3359_v45, %v3356_v44 }
 0x448   : > { %v2678_v7 = vpop.eup %2677 }
 0x449   : > { %v1506_v3 = vadd.f32 %v1502_v51, %v1468_v32  ;;  %v1505_v54 = vadd.f32 %v1501_v31, %v1467_v39  ;;  %v1430_v31 = vmul.f32 %v1426_v15, %v1410_v14 }
 0x44a   : > { %v1582_v34 = vpop.permute.xlu1 %1581  ;;  %v1522_v43 = vpop.permute.xlu0 %1521 }
 0x44b   : > { %v1597_v41 = vmul.f32 %v3075_v55, %v1582_v34  ;;  %v1564_v33 = vmul.f32 %v2672_v4, %v1506_v3  ;;  %v1563_v52 = vmul.f32 %v2674_v10, %v1505_v54  ;;  %v2680_v6 = vpop.eup %2679  ;;  %v1526_v53 = vmul.f32 %v1522_v43, %v1506_v3 }
 0x44c   : > { %v2682_v18 = vpop.eup %2681 }
 0x44d   : > { %v3379_v38 = vadd.f32 %v1598_v49, %v1564_v33  ;;  %v3381_v61 = vadd.f32 %v1597_v41, %v1563_v52  ;;  %v2684_v50 = vpop.eup %2683 }
 0x44e   : > { %v1678_v24 = vpop.permute.xlu1 %1677  ;;  %v1874_v16 = vpop.permute.xlu0 %1873 }
 0x44f   : > { %v1693_v36 = vmul.f32 %v3079_v56, %v1678_v24  ;;  %v1660_v13 = vmul.f32 %v2676_v46, %v3379_v38  ;;  %v1659_v55 = vmul.f32 %v2678_v7, %v3381_v61  ;;  %v2686_v12 = vpop.eup %2685  ;;  %v1886_v63 = vmul.f32 %v3089_v59, %v1874_v16 }
 0x451   : > { %v3388_v25 = vadd.f32 %v1694_v48, %v1660_v13  ;;  %v3390_v28 = vadd.f32 %v1693_v36, %v1659_v55 }
 0x452   : > { %v1774_v42 = vpop.permute.xlu1 %1773  ;;  %v1618_v58 = vpop.permute.xlu0 %1617 }
 0x453   : > { %v1789_v40 = vmul.f32 %v3083_v57, %v1774_v42  ;;  %v1756_v1 = vmul.f32 %v2680_v6, %v3388_v25  ;;  %v1755_v56 = vmul.f32 %v2682_v18, %v3390_v28  ;;  %v1622_v3 = vmul.f32 %v1618_v58, %v3379_v38 }
 0x455   : > { %v3397_v2 = vadd.f32 %v1790_v47, %v1756_v1  ;;  %v3399_v5 = vadd.f32 %v1789_v40, %v1755_v56 }
 0x456   : > { %v1230_v21 = vpop.permute.xlu1 %1229  ;;  %v1714_v14 = vpop.permute.xlu0 %1713 }
 0x457   : > { %v1852_v22 = vmul.f32 %v2684_v50, %v3397_v2  ;;  %v1851_v29 = vmul.f32 %v2686_v12, %v3399_v5  ;;  %v1237_v57 = vmul.f32 %v1230_v21, %v3320_v35  ;;  %v1962_v35 = vsub.f32 0.0, %v2955_v20 }
 0x459   : > { %v3405_v17 = vadd.f32 %v1886_v63, %v1852_v22  ;;  %v1246_v11 = vadd.f32 %v1238_v27, %v1237_v57  ;;  %v1965_v45 = vmul.f32 1.442695, %v1962_v35 }
 0x45a   : > { %v1326_v26 = vpop.permute.xlu1 %1325  ;;  %v1810_v42 = vpop.permute.xlu0 %1809 }
 0x45b   : > { %v1333_v19 = vmul.f32 %v1326_v26, %v3349_v23  ;;  %v1247_v4 = vrot.slane %v1246_v11, 4  ;;  %2687 = vpow2.f32 %v1965_v45  ;;  %v1814_v27 = vmul.f32 %v1810_v42, %v3397_v2 }
 0x45d   : > { %v1342_v37 = vadd.f32 %v1334_v9, %v1333_v19  ;;  %v1248_v44 = vadd.f32 %v1247_v4, %v1246_v11 }
 0x45e   : > { %v1422_v51 = vpop.permute.xlu1 %1421  ;;  %v1906_v26 = vpop.permute.xlu0 %1905 }
 0x45f   : > { %v1343_v32 = vrot.slane %v1342_v37, 4  ;;  %v1429_v39 = vmul.f32 %v1422_v51, %v3370_v60  ;;  %v1249_v7 = vrot.slane %v1248_v44, 2  ;;  %v1910_v4 = vmul.f32 %v1906_v26, %v3405_v17  ;;  %v2429_v26 = vld [vmem:[%s3509_s22] ss:$0 sm:$0xff] (!%p2428_p6) }
 0x461   : > { %v1438_v10 = vadd.f32 %v1430_v31, %v1429_v39  ;;  %v1344_v34 = vadd.f32 %v1343_v32, %v1342_v37  ;;  %v1250_v6 = vadd.f32 %v1249_v7, %v1248_v44 }
 0x462   : > { %v1518_v30 = vpop.permute.xlu1 %1517 }
 0x463   : > { %v1439_v49 = vrot.slane %v1438_v10, 4  ;;  %v1525_v41 = vmul.f32 %v1518_v30, %v1505_v54  ;;  %v1345_v52 = vrot.slane %v1344_v34, 2  ;;  %v1251_v12 = vrot.slane %v1250_v6, 1 }
 0x465   : > { %v1440_v23 = vadd.f32 %v1439_v49, %v1438_v10  ;;  %v1534_v33 = vadd.f32 %v1526_v53, %v1525_v41  ;;  %v1346_v13 = vadd.f32 %v1345_v52, %v1344_v34  ;;  %v1252_v37 = vadd.f32 %v1251_v12, %v1250_v6  ;;  %v2692_v12 = vld [vmem:[#allocation2 + $0x8] sm:$0xff] }
 0x466   : > { %v1870_v46 = vpop.permute.xlu1 %1869 }
 0x467   : > { %v1535_v15 = vrot.slane %v1534_v33, 4  ;;  %v1885_v60 = vmul.f32 %v3089_v59, %v1870_v46  ;;  %v1441_v24 = vrot.slane %v1440_v23, 2  ;;  %v1347_v40 = vrot.slane %v1346_v13, 1 }
 0x468   : > { %v1718_v59 = vmul.f32 %v1714_v14, %v3388_v25 }
 0x469   : > { %v1536_v48 = vadd.f32 %v1535_v15, %v1534_v33  ;;  %v1889_v36 = vadd.f32 %v1885_v60, %v1851_v29  ;;  %v1442_v18 = vadd.f32 %v1441_v24, %v1440_v23  ;;  %v1348_v38 = vadd.f32 %v1347_v40, %v1346_v13 }
 0x46a   : > { %v1614_v55 = vpop.permute.xlu1 %1613 }
 0x46b   : > { %v1537_v54 = vrot.slane %v1536_v48, 2  ;;  %v1621_v43 = vmul.f32 %v1614_v55, %v3381_v61  ;;  %v1443_v21 = vrot.slane %v1442_v18, 1  ;;  %v2688_v61 = vpop.eup %2687  ;;  %v1927_v39 = vsel %vm1925_vm13, %v1252_v37, %v1348_v38  ;;  %v2697_v38 = vld [vmem:[%s3508_s14 + $0x20] sm:$0xff] (!%p2428_p6)  }
 0x46c   : > { %v1968_v32 = vadd.f32 1.0, %v2688_v61  ;;  %v2700_v61 = vld [vmem:[%s3508_s14 + $0x38] sm:$0xff] (!%p2428_p6)  }
 0x46d   : > { %v1630_v47 = vadd.f32 %v1622_v3, %v1621_v43  ;;  %v1538_v1 = vadd.f32 %v1537_v54, %v1536_v48  ;;  %v1444_v25 = vadd.f32 %v1443_v21, %v1442_v18  ;;  %v1958_v43 = vmul.f32 %v3340_v8, %v2983_v0  ;;  %v2694_v8 = vld [vmem:[%s3508_s14 + $0x8] sm:$0xff] (!%p2428_p6)  }
 0x46e   : > { %v1710_v56 = vpop.permute.xlu1 %1709  ;;  %2689 = vrcp.f32 %v1968_v32  ;;  %v2734_v0 = vmov (!%p2428_p6), 0.0  }
 0x46f   : > { %v1631_v50 = vrot.slane %v1630_v47, 4  ;;  %v1717_v16 = vmul.f32 %v1710_v56, %v3390_v28  ;;  %v1539_v29 = vrot.slane %v1538_v1, 1  ;;  %v1930_v53 = vsel %vm1928_vm14, %v1927_v39, %v1444_v25  ;;  %v2691_v56 = vld [vmem:[#allocation2] sm:$0xff]  ;;  %2492 = vmatprep.subr.bf16.mxu0 (!%p2428_p6), %v2734_v0 }
 0x471   : > { %v1632_v63 = vadd.f32 %v1631_v50, %v1630_v47  ;;  %v1726_v22 = vadd.f32 %v1718_v59, %v1717_v16  ;;  %v1540_v35 = vadd.f32 %v1539_v29, %v1538_v1  ;;  %v2698_v29 = vld [vmem:[%s3508_s14 + $0x28] sm:$0xff] (!%p2428_p6)  }
 0x472   : > { %v1806_v57 = vpop.permute.xlu1 %1805 }
 0x473   : > { %v1633_v9 = vrot.slane %v1632_v63, 2  ;;  %v1727_v19 = vrot.slane %v1726_v22, 4  ;;  %v1813_v11 = vmul.f32 %v1806_v57, %v3399_v5  ;;  %v1933_v45 = vsel %vm1931_vm15, %v1930_v53, %v1540_v35  ;;  %v2699_v57 = vld [vmem:[%s3508_s14 + $0x30] sm:$0xff] (!%p2428_p6)  }
 0x475   : > { %v1634_v51 = vadd.f32 %v1633_v9, %v1632_v63  ;;  %v1728_v31 = vadd.f32 %v1727_v19, %v1726_v22  ;;  %v1822_v28 = vadd.f32 %v1814_v27, %v1813_v11  ;;  %v2696_v22 = vld [vmem:[%s3508_s14 + $0x18] sm:$0xff] (!%p2428_p6)  }
 0x476   : > { %v1902_v58 = vpop.permute.xlu1 %1901 }
 0x477   : > { %v1635_v10 = vrot.slane %v1634_v51, 1  ;;  %v1729_v34 = vrot.slane %v1728_v31, 2  ;;  %v1823_v2 = vrot.slane %v1822_v28, 4  ;;  %v1909_v30 = vmul.f32 %v1902_v58, %v1889_v36 }
 0x478   : > { %v2690_v3 = vpop.eup %2689 }
 0x479   : > { %v1636_v49 = vadd.f32 %v1635_v10, %v1634_v51  ;;  %v1730_v5 = vadd.f32 %v1729_v34, %v1728_v31  ;;  %v1824_v41 = vadd.f32 %v1823_v2, %v1822_v28  ;;  %v1918_v44 = vadd.f32 %v1910_v4, %v1909_v30 }
 0x47a   : > { %v1972_v18 = vmul.f32 %v2690_v3, %v2955_v20  ;;  %v2693_v20 = vld [vmem:[%s3507_s30] sm:$0xff] (!%p2428_p6)   ;;  %s3510_s30 = sld [smem:[#allocation11_spill]] (!%p2428_p6) }
 0x47b   : > { %v1936_v23 = vsel %vm1934_vm0, %v1933_v45, %v1636_v49  ;;  %v1731_v33 = vrot.slane %v1730_v5, 1  ;;  %v1825_v52 = vrot.slane %v1824_v41, 2  ;;  %v1919_v17 = vrot.slane %v1918_v44, 4 }
 0x47d   : > { %v1732_v46 = vadd.f32 %v1731_v33, %v1730_v5  ;;  %v1826_v14 = vadd.f32 %v1825_v52, %v1824_v41  ;;  %v1920_v15 = vadd.f32 %v1919_v17, %v1918_v44 }
 0x47f   : > { %v1939_v60 = vsel %vm1937_vm1, %v1936_v23, %v1732_v46  ;;  %v1827_v7 = vrot.slane %v1826_v14, 1  ;;  %v1921_v24 = vrot.slane %v1920_v15, 2 }
 0x480   : > { %s3511_s4 = smov (!%p2428_p6), %s3510_s30 }
 0x481   : > { %v1828_v48 = vadd.f32 %v1827_v7, %v1826_v14  ;;  %v1922_v36 = vadd.f32 %v1921_v24, %v1920_v15 }
 0x483   : > { %v1942_v13 = vsel %vm1940_vm2, %v1939_v60, %v1828_v48  ;;  %v1923_v55 = vrot.slane %v1922_v36, 1 }
 0x485   : > { %v1924_v54 = vadd.f32 %v1923_v55, %v1922_v36 }
 0x487   : > { %v1945_v6 = vsel %vm1943_vm3, %v1942_v13, %v1924_v54 }
 0x488   : > { %v1960_v42 = vadd.f32 %v1958_v43, %v1945_v6 }
 0x48a   : > { %v1974_v47 = vmul.f32 %v1972_v18, %v1960_v42 }
 0x48c   : > { %v1975_v40 = vpack.c.bf16 %v1974_v47, %v3372_v62  ;;  %v2695_v62 = vld [vmem:[%s3508_s14 + $0x10] sm:$0xff] (!%p2428_p6)  }
 0x48e   : > { %2489 = vmatmul.mubr.bf16.vlgmr.msra.gmra.mrb[4].mxu0 %v1975_v40 }
 0x48f   : > { %2493 = vmatpush3.bf16.msra.mxu0 (!%p2428_p6), %v2693_v20  ;;  %2508 = vmatprep.mubr.msk.bf16.mxu0 (!%p2428_p6), %vm2735_vm4, %v2734_v0 }
 0x490   : > { %2494 = vmatprep.subr.bf16.mxu0 (!%p2428_p6), %v2734_v0 }
 0x493   : > { %2495 = vmatpush3.bf16.msra.mxu0 (!%p2428_p6), %v2694_v8 }
 0x494   : > { %2496 = vmatprep.subr.bf16.mxu0 (!%p2428_p6), %v2734_v0 }
 0x497   : > { %2497 = vmatpush3.bf16.msra.mxu0 (!%p2428_p6), %v2695_v62 }
 0x498   : > { %2498 = vmatprep.subr.bf16.mxu0 (!%p2428_p6), %v2734_v0 }
 0x49b   : > { %2499 = vmatpush3.bf16.msra.mxu0 (!%p2428_p6), %v2696_v22 }
 0x49c   : > { %2500 = vmatprep.subr.bf16.mxu0 (!%p2428_p6), %v2734_v0 }
 0x49f   : > { %2501 = vmatpush3.bf16.msra.mxu0 (!%p2428_p6), %v2697_v38 }
 0x4a0   : > { %2502 = vmatprep.subr.bf16.mxu0 (!%p2428_p6), %v2734_v0 }
 0x4a3   : > { %2503 = vmatpush3.bf16.msra.mxu0 (!%p2428_p6), %v2698_v29 }
 0x4a4   : > { %2504 = vmatprep.subr.bf16.mxu0 (!%p2428_p6), %v2734_v0 }
 0x4a7   : > { %2505 = vmatpush3.bf16.msra.mxu0 (!%p2428_p6), %v2699_v57 }
 0x4a8   : > { %2506 = vmatprep.subr.bf16.mxu0 (!%p2428_p6), %v2734_v0 }
 0x4ab   : > { %2507 = vmatpush3.bf16.msra.mxu0 (!%p2428_p6), %v2700_v61 }
 0x560   : > { %2088 = sbr.rel (%p2428_p6) target bundleno = 1612 (0x64c), region = 84 }
 0x561   : > { %v2074_v1 = vpop.f32.mrb[4].mxu0 }
 0x562   : > { %v2081_v59 = vadd.f32 %v2691_v56, %v2074_v1  ;;  %v2490_v50 = vpop.f32.mrb[5].mxu0 }
 0x563   : > { %v2077_v16 = vpop.f32.mrb[6].mxu0 }
 0x564   : > { %2083 = vst [vmem:[#allocation2] sm:$0xff] %v2081_v59  ;;  %v2082_v21 = vadd.f32 %v2692_v12, %v2077_v16  ;;  %v2491_v63 = vpop.f32.mrb[7].mxu0 }
 0x566   : > { %2084 = vst [vmem:[#allocation2 + $0x8] sm:$0xff] %v2082_v21  ;;  %v2089_v27 = vpack.c.bf16 (!%p2428_p6), %v2082_v21, %v2081_v59 }
 0x568   : > { %2509 = vmatmul.mubr.bf16.vlgmr.msra.gmra.mrb[0].mxu0 %v2089_v27 }
 0x63b   : > { %v2195_v9 = vpop.f32.mrb[0].mxu0 }
 0x63c   : > { %v2196_v19 = vadd.f32 %v2429_v26, %v2195_v9  ;;  %v2510_v11 = vpop.f32.mrb[1].mxu0 }
 0x63d   : > { %v2198_v37 = vpop.f32.mrb[2].mxu0 }
 0x63e   : > { %2701 = vtanh.f32 %v2196_v19  ;;  %v2199_v25 = vadd.f32 %v2429_v26, %v2198_v37  ;;  %v2511_v51 = vpop.f32.mrb[3].mxu0 }
 0x640   : > { %2703 = vtanh.f32 %v2199_v25 }
 0x648   : > { %v2702_v31 = vpop.eup %2701 }
 0x649   : > { %2204 = vst [vmem:[%s3510_s30] sm:$0xff] %v2702_v31 }
 0x64a   : > { %v2704_v28 = vpop.eup %2703 }
 0x64b   : > { %2205 = vst [vmem:[%s3511_s4 + $0x8] sm:$0xff] %v2704_v28 }
 0x64c PF: > { %s3512_s16 = sld [smem:[#allocation5_spill]]  ;;  %s3513_s29 = sld [smem:[#allocation4_spill]] }
 0x64d   : > { %s3514_s30 = sld [smem:[#allocation6_spill]] }
 0x652   : > { %s24_s15 = sadd.s32 1, %s3512_s16  }
 0x653   : > { %p21_p7 = scmp.ge.s32.totalorder %s24_s15, 4  }
 0x655   :  { %23 = sbr.rel (!%p21_p7) target bundleno = 6 (0x6), region = 141 }

</bundles_post_ra>
